<compile_context>
chip_gen: v7x
topology: tpu7x:2x2x1
jax: 0.10.0
libtpu: 0.0.40
codegen_flags: <defaults>
</compile_context>

<pallas_src>
import functools

import jax
import jax.numpy as jnp
from jax.experimental import pallas as pl
from jax.experimental.pallas import tpu as pltpu


# --------------------------------------------------------------------------
# Chip-aware VMEM budgeting / tile selection
# --------------------------------------------------------------------------
@functools.lru_cache(maxsize=1)
def _vmem_limit_bytes():
    """Scoped-VMEM limit: ~3/4 of physical (48 MiB on v7x, 96 MiB v5e/v6e)."""
    cap = 64 * 1024 * 1024  # safe fallback = v7x physical VMEM per TensorCore
    try:
        info = pltpu.get_tpu_info()
        cap = int(getattr(info, "vmem_capacity_bytes", cap)) or cap
    except Exception:
        pass
    return min((cap * 3) // 4, 112 * 1024 * 1024)


def _tile_budget():
    # Leave headroom beyond our rough estimate for Mosaic internal scratch.
    return (_vmem_limit_bytes() * 4) // 5


def _pick_tile(dim, cap, multiple):
    """Largest tile <= cap that divides dim and is a multiple of `multiple`
    (full dim if dim <= cap, or if no aligned divisor exists)."""
    if dim <= cap:
        return dim
    for t in range(cap - cap % multiple, 0, -multiple):
        if dim % t == 0:
            return t
    return dim  # full dim is always a legal (if large) block


def _moe_tiles(T, C, O, E, tm=512, tn=256, tk=512):
    tm = _pick_tile(T, tm, 8)
    tn = _pick_tile(O, tn, 128)
    tk = _pick_tile(C, tk, 128)
    budget = _tile_budget()

    def est(tm, tn, tk):
        w = 2 * E * tk * (3 * tn) * 2          # packed weights, dbl-buffered bf16
        x = 2 * tm * tk * 2                    # tokens, dbl-buffered bf16
        outs = 2 * 3 * tm * tn * 2             # q/k/v outputs, dbl-buffered bf16
        accs = 3 * tm * tn * 4                 # f32 accumulators
        gates = 2 * 3 * tm * max(E, 128) * 4   # gate tiles (lane padded)
        tmp = tm * (3 * tn) * 4                # per-expert f32 matmul result
        return w + x + outs + accs + gates + tmp

    # Shrink (tk first: matters most for E-scaled weight buffers on v7x's
    # 64 MiB VMEM); halving preserves both divisibility and 128-lane alignment.
    while est(tm, tn, tk) > budget:
        if tk % 256 == 0:
            tk //= 2
        elif tn % 256 == 0:
            tn //= 2
        elif tm % 16 == 0 and tm > 64:
            tm //= 2
        else:
            break
    return tm, tn, tk


def _pick_head_block(B, H, N, D, tq, tkv, budget, min_steps=8):
    """Largest head block that fits VMEM while leaving enough grid steps to
    pipeline and to feed both TensorCores (v7x)."""
    lane_d = max(D, 128)

    def est(hb):
        io = 2 * 2 * hb * (2 * tq + 2 * tkv) * lane_d    # q,o + k,v dbl-buffered bf16
        scratch = hb * tq * (2 * 128 + lane_d) * 4       # m, l, acc (f32)
        interm = 3 * hb * tq * max(tkv, 128) * 4         # s, p, p.bf16
        return io + scratch + interm

    divisors = [d for d in range(H, 0, -1) if H % d == 0]
    fitting = [hb for hb in divisors if est(hb) <= budget] or [1]
    n_steps = lambda hb: B * (H // hb) * (N // tq) * (N // tkv)
    for hb in fitting:                       # decreasing hb
        if n_steps(hb) >= min_steps:
            return hb
    return fitting[0]


# --------------------------------------------------------------------------
# Pallas kernels
# --------------------------------------------------------------------------
def moe_qkv_kernel(x_ref, w_ref, gq_ref, gk_ref, gv_ref,
                   q_ref, k_ref, v_ref, acc_q, acc_k, acc_v):
    """Fused q/k/v MoE projections for one (token, out, reduction) tile.

    x_ref:    (tm, tk)        bf16 tokens (read once, shared by q/k/v)
    w_ref:    (E, tk, 3*tn)   bf16 packed expert weights, native (K, N) layout,
                              interleaved [q|k|v] per out-tile
    g*_ref:   (tm, E)         f32 dense combine weights (0 if not selected);
                              gq already carries the attention scale
    q/k/v_ref:(tm, tn)        bf16 outputs
    acc_*:    (tm, tn)        f32 accumulators, resident across the C axis
    """
    kk = pl.program_id(2)

    @pl.when(kk == 0)
    def _init():
        acc_q[...] = jnp.zeros_like(acc_q)
        acc_k[...] = jnp.zeros_like(acc_k)
        acc_v[...] = jnp.zeros_like(acc_v)

    x = x_ref[...]
    gq = gq_ref[...]
    gk = gk_ref[...]
    gv = gv_ref[...]
    num_experts = w_ref.shape[0]
    tn = acc_q.shape[1]

    # TODO(synk): dense expert loop; grouped-GEMM (sort tokens by expert +
    # scalar-prefetch index_map) would skip experts with zero gate weight.
    for e in range(num_experts):  # E is small & static -> unrolled MXU matmuls
        # One long MXU push per expert: (tm, tk) x (tk, 3*tn), no RHS transpose.
        y = jax.lax.dot_general(x, w_ref[e], (((1,), (0,)), ((), ())),
                                preferred_element_type=jnp.float32)
        acc_q[...] += gq[:, e:e + 1] * y[:, 0 * tn:1 * tn]
        acc_k[...] += gk[:, e:e + 1] * y[:, 1 * tn:2 * tn]
        acc_v[...] += gv[:, e:e + 1] * y[:, 2 * tn:3 * tn]

    @pl.when(kk == pl.num_programs(2) - 1)
    def _finalize():
        q_ref[...] = acc_q[...].astype(q_ref.dtype)
        k_ref[...] = acc_k[...].astype(k_ref.dtype)
        v_ref[...] = acc_v[...].astype(v_ref.dtype)


def flash_attn_kernel(q_ref, k_ref, v_ref, o_ref, m_sc, l_sc, acc_sc):
    """KV-tiled online-softmax attention for one (batch, head-block, q-tile).

    q_ref: (1, hb, tq, D) bf16 (q already scaled via the gate weights)
    k/v:   (1, hb, tkv, D) bf16
    o_ref: (1, hb, tq, D) bf16
    m/l:   (hb, tq, 1) f32, acc: (hb, tq, D) f32 — resident across the KV axis.
    """
    ki = pl.program_id(3)

    @pl.when(ki == 0)
    def _init():
        m_sc[...] = jnp.full_like(m_sc, -1e30)
        l_sc[...] = jnp.zeros_like(l_sc)
        acc_sc[...] = jnp.zeros_like(acc_sc)

    q = q_ref[0]                                              # (hb, tq, D)
    k = k_ref[0]                                              # (hb, tkv, D)
    v = v_ref[0]
    s = jnp.einsum("hqd,hkd->hqk", q, k,
                   preferred_element_type=jnp.float32)        # (hb, tq, tkv) f32
    m_prev = m_sc[...]
    m_new = jnp.maximum(m_prev, jnp.max(s, axis=-1, keepdims=True))
    alpha = jnp.exp(m_prev - m_new)
    p = jnp.exp(s - m_new)
    l_sc[...] = alpha * l_sc[...] + jnp.sum(p, axis=-1, keepdims=True)
    acc_sc[...] = alpha * acc_sc[...] + jnp.einsum(
        "hqk,hkd->hqd", p.astype(v.dtype), v,
        preferred_element_type=jnp.float32)
    m_sc[...] = m_new

    @pl.when(ki == pl.num_programs(3) - 1)
    def _finalize():
        inv = pl.reciprocal(l_sc[...], approx=True)           # EUP, frees VPU
        o_ref[0] = (acc_sc[...] * inv).astype(o_ref.dtype)


def proj_kernel(x_ref, w_ref, b_ref, o_ref, acc_ref):
    """Tiled Linear with pre-transposed (K, N) weight: out = x @ Wt + b."""
    kk = pl.program_id(2)

    @pl.when(kk == 0)
    def _init():
        acc_ref[...] = jnp.zeros_like(acc_ref)

    acc_ref[...] += jax.lax.dot_general(
        x_ref[...], w_ref[...], (((1,), (0,)), ((), ())),
        preferred_element_type=jnp.float32)

    @pl.when(kk == pl.num_programs(2) - 1)
    def _finalize():
        # NOTE(synk): kept f32 (module boundary); use bf16 if downstream allows.
        o_ref[...] = (acc_ref[...] + b_ref[...]).astype(o_ref.dtype)


# --------------------------------------------------------------------------
# Wrappers
# --------------------------------------------------------------------------
def moe_qkv(x, wq, wk, wv, gq, gk, gv):
    """Fused q/k/v dense-MoE projections. Returns three (T, O) bf16 arrays."""
    T, C = x.shape
    E, O, _ = wq.shape
    tm, tn, tk = _moe_tiles(T, C, O, E)
    assert T % tm == 0 and O % tn == 0 and C % tk == 0
    grid = (T // tm, O // tn, C // tk)

    # Pack once: torch (E, O, C) -> native-(K, N) (E, C, O), interleaved per
    # tn-tile along the last axis so one dot per expert yields [q|k|v] slices.
    # TODO(synk): hoist this packing out of the per-step function in real use.
    nt = O // tn

    def _t(w):
        return jnp.transpose(w.astype(jnp.bfloat16), (0, 2, 1)).reshape(E, C, nt, tn)

    w_packed = jnp.stack([_t(wq), _t(wk), _t(wv)], axis=3).reshape(E, C, 3 * O)

    x_spec = pl.BlockSpec((tm, tk), lambda i, j, k: (i, k))
    w_spec = pl.BlockSpec((E, tk, 3 * tn), lambda i, j, k: (0, k, j))
    g_spec = pl.BlockSpec((tm, E), lambda i, j, k: (i, 0))
    o_spec = pl.BlockSpec((tm, tn), lambda i, j, k: (i, j))
    out_sd = jax.ShapeDtypeStruct((T, O), jnp.bfloat16)

    return pl.pallas_call(
        moe_qkv_kernel,
        out_shape=(out_sd, out_sd, out_sd),
        grid_spec=pltpu.PrefetchScalarGridSpec(
            num_scalar_prefetch=0,
            grid=grid,
            in_specs=[x_spec, w_spec, g_spec, g_spec, g_spec],
            out_specs=(o_spec, o_spec, o_spec),
            scratch_shapes=[pltpu.VMEM((tm, tn), jnp.float32)] * 3),
        compiler_params=pltpu.CompilerParams(
            dimension_semantics=("parallel", "parallel", "arbitrary"),
            vmem_limit_bytes=_vmem_limit_bytes()),
    )(x, w_packed, gq, gk, gv)


def flash_attention(qh, kh, vh, *, tq=256, tkv=512, head_block=None):
    """qh/kh/vh: (B, H, N, D) bf16 -> (B, H, N, D) bf16 (q pre-scaled)."""
    B, H, N, D = qh.shape
    tq = _pick_tile(N, tq, 8)
    tkv = _pick_tile(N, tkv, 8)
    hb = (_pick_head_block(B, H, N, D, tq, tkv, _tile_budget())
          if head_block is None else head_block)
    assert H % hb == 0 and N % tq == 0 and N % tkv == 0
    grid = (B, H // hb, N // tq, N // tkv)

    q_spec = pl.BlockSpec((1, hb, tq, D), lambda b, h, qi, ki: (b, h, qi, 0))
    kv_spec = pl.BlockSpec((1, hb, tkv, D), lambda b, h, qi, ki: (b, h, ki, 0))

    return pl.pallas_call(
        flash_attn_kernel,
        out_shape=jax.ShapeDtypeStruct((B, H, N, D), qh.dtype),
        grid_spec=pltpu.PrefetchScalarGridSpec(
            num_scalar_prefetch=0,
            grid=grid,
            in_specs=[q_spec, kv_spec, kv_spec],
            out_specs=q_spec,
            scratch_shapes=[pltpu.VMEM((hb, tq, 1), jnp.float32),
                            pltpu.VMEM((hb, tq, 1), jnp.float32),
                            pltpu.VMEM((hb, tq, D), jnp.float32)]),
        compiler_params=pltpu.CompilerParams(
            dimension_semantics=("parallel", "parallel", "parallel", "arbitrary"),
            vmem_limit_bytes=_vmem_limit_bytes()),
    )(qh, kh, vh)


def proj_linear(x, w, b, *, tm=512, tn=256, tk=512):
    """x: (T, C) bf16, w: (O, C) torch layout, b: (O,) -> (T, O) f32."""
    T, C = x.shape
    O = w.shape[0]
    tm = _pick_tile(T, tm, 8)
    tn = _pick_tile(O, tn, 128)
    tk = _pick_tile(C, tk, 128)
    assert T % tm == 0 and O % tn == 0 and C % tk == 0
    grid = (T // tm, O // tn, C // tk)
    wt = jnp.transpose(w.astype(jnp.bfloat16), (1, 0))   # (C, O): native (K, N)
    return pl.pallas_call(
        proj_kernel,
        out_shape=jax.ShapeDtypeStruct((T, O), jnp.float32),
        grid_spec=pltpu.PrefetchScalarGridSpec(
            num_scalar_prefetch=0,
            grid=grid,
            in_specs=[
                pl.BlockSpec((tm, tk), lambda i, j, k: (i, k)),
                pl.BlockSpec((tk, tn), lambda i, j, k: (k, j)),
                pl.BlockSpec((1, tn), lambda i, j, k: (0, j)),
            ],
            out_specs=pl.BlockSpec((tm, tn), lambda i, j, k: (i, j)),
            scratch_shapes=[pltpu.VMEM((tm, tn), jnp.float32)]),
        compiler_params=pltpu.CompilerParams(
            dimension_semantics=("parallel", "parallel", "arbitrary"),
            vmem_limit_bytes=_vmem_limit_bytes()),
    )(x, wt, b.reshape(1, O).astype(jnp.float32))


def noisy_gate_eval(x, w_gate, top_k):
    """NoisyGate in eval mode -> dense (T, E) combine-weight matrix (f32)."""
    logits = x @ w_gate                                  # (T, E)
    top_logits, top_idx = jax.lax.top_k(logits, top_k)   # (T, k)
    top_scores = jax.nn.softmax(top_logits, axis=-1)     # softmax over top-k
    E = w_gate.shape[1]
    onehot = jax.nn.one_hot(top_idx, E, dtype=jnp.float32)   # (T, k, E)
    return jnp.sum(onehot * top_scores[..., None], axis=1)   # (T, E)


def attention_moe_qkv_forward(x, params, *, num_heads, top_k):
    B, N, C = x.shape
    H = num_heads
    assert C % H == 0
    D = C // H
    scale = D ** (-0.5)
    T = B * N
    xt = x.reshape(T, C).astype(jnp.float32)

    # Gate in exact f32 outside the kernels; the attention scale is folded into
    # the q combine weights (it rides the gating multiply for free).
    gq = noisy_gate_eval(xt, params["q"]["w_gate"], top_k) * jnp.float32(scale)
    gk = noisy_gate_eval(xt, params["k"]["w_gate"], top_k)
    gv = noisy_gate_eval(xt, params["v"]["w_gate"], top_k)

    # bf16 at the pallas_call boundary, f32 accumulation inside.
    xb = xt.astype(jnp.bfloat16)
    q, k, v = moe_qkv(xb, params["q"]["w_expert"], params["k"]["w_expert"],
                      params["v"]["w_expert"], gq, gk, gv)   # each (T, C) bf16

    def to_heads(t):  # (T, C) -> (B, H, N, D)
        return t.reshape(B, N, H, D).transpose(0, 2, 1, 3)

    # TODO(synk): split heads in-kernel on the (T, C) layout to remove these
    #             4 HBM transpose round-trips (needs lane-dense (N, hb*D) tiles).
    attn_out = flash_attention(to_heads(q), to_heads(k), to_heads(v))
    ctx = attn_out.transpose(0, 2, 1, 3).reshape(T, C)       # (T, C) bf16
    out = proj_linear(ctx, params["proj_w"], params["proj_b"])
    return out.reshape(B, N, C)


# --------------------------------------------------------------------------
# Pure-JAX f32 reference (for sanity)
# --------------------------------------------------------------------------
def reference_forward(x, params, *, num_heads, top_k):
    B, N, C = x.shape
    H, D = num_heads, C // num_heads
    scale = D ** (-0.5)
    xt = x.reshape(-1, C)

    def moe_branch(p):
        gw = noisy_gate_eval(xt, p["w_gate"], top_k)          # (T, E)
        y_all = jnp.einsum("tc,eoc->eto", xt, p["w_expert"])  # (E, T, O)
        return jnp.einsum("te,eto->to", gw, y_all)

    def to_heads(t):
        return t.reshape(B, N, H, D).transpose(0, 2, 1, 3)

    q, k, v = (to_heads(moe_branch(params[n])) for n in ("q", "k", "v"))
    s = jnp.einsum("bhnd,bhmd->bhnm", q, k) * scale
    p = jax.nn.softmax(s, axis=-1)
    ctx = jnp.einsum("bhnm,bhmd->bhnd", p, v).transpose(0, 2, 1, 3).reshape(-1, C)
    out = ctx @ params["proj_w"].T + params["proj_b"]
    return out.reshape(B, N, C)


# --------------------------------------------------------------------------
# Main
# --------------------------------------------------------------------------
if __name__ == "__main__":
    B, N, C = 2, 8, 32          # batch, sequence, embed dim
    H = 4                       # num_heads -> head_dim 8
    E = 4                       # num_experts
    TOP_K = 2

    key = jax.random.PRNGKey(0)
    keys = jax.random.split(key, 12)

    def mk(k, shape, scale=0.1):
        return (scale * jax.random.normal(k, shape)).astype(jnp.float32)

    params = {
        "q": {"w_gate": mk(keys[0], (C, E)), "w_expert": mk(keys[1], (E, C, C))},
        "k": {"w_gate": mk(keys[2], (C, E)), "w_expert": mk(keys[3], (E, C, C))},
        "v": {"w_gate": mk(keys[4], (C, E)), "w_expert": mk(keys[5], (E, C, C))},
        "proj_w": mk(keys[6], (C, C)),
        "proj_b": mk(keys[7], (C,)),
    }
    x = mk(keys[8], (B, N, C), scale=1.0)

    fwd = jax.jit(functools.partial(attention_moe_qkv_forward,
                                    num_heads=H, top_k=TOP_K))
    out = fwd(x, params)
    jax.block_until_ready(out)

    ref = reference_forward(x, params, num_heads=H, top_k=TOP_K)
    assert out.shape == (B, N, C)
    # bf16 matmul inputs + approx reciprocal -> compare with a loose tolerance.
    assert jnp.allclose(out, ref, rtol=5e-2, atol=5e-2), (
        "mismatch vs reference: max abs diff = "
        f"{float(jnp.max(jnp.abs(out - ref)))}")

    print("KERNEL_OK")
</pallas_src>

<mosaic_0001>
module attributes {stable_mosaic.version = 11 : i64} {
  func.func @moe_qkv_kernel(%arg0: i32, %arg1: i32, %arg2: i32, %arg3: memref<16x32xbf16, #tpu.memory_space<vmem>>, %arg4: memref<4x32x96xbf16, #tpu.memory_space<vmem>>, %arg5: memref<16x4xf32, #tpu.memory_space<vmem>>, %arg6: memref<16x4xf32, #tpu.memory_space<vmem>>, %arg7: memref<16x4xf32, #tpu.memory_space<vmem>>, %arg8: memref<16x32xbf16, #tpu.memory_space<vmem>>, %arg9: memref<16x32xbf16, #tpu.memory_space<vmem>>, %arg10: memref<16x32xbf16, #tpu.memory_space<vmem>>, %arg11: memref<16x32xf32, #tpu.memory_space<vmem>>, %arg12: memref<16x32xf32, #tpu.memory_space<vmem>>, %arg13: memref<16x32xf32, #tpu.memory_space<vmem>>) attributes {dimension_semantics = [#tpu.dimension_semantics<parallel>, #tpu.dimension_semantics<parallel>, #tpu.dimension_semantics<arbitrary>], iteration_bounds = array<i64: 1, 1, 1>, scalar_prefetch = 0 : i64, scratch_operands = 3 : i64, tpu.core_type = #tpu.core_type<tc>, window_params = [{transform_indices = @transform_0, window_bounds = array<i64: 16, 32>}, {transform_indices = @transform_1, window_bounds = array<i64: 4, 32, 96>}, {transform_indices = @transform_2, window_bounds = array<i64: 16, 4>}, {transform_indices = @transform_3, window_bounds = array<i64: 16, 4>}, {transform_indices = @transform_4, window_bounds = array<i64: 16, 4>}, {transform_indices = @transform_5, window_bounds = array<i64: 16, 32>}, {transform_indices = @transform_6, window_bounds = array<i64: 16, 32>}, {transform_indices = @transform_7, window_bounds = array<i64: 16, 32>}]} {
    %c0_i32 = arith.constant 0 : i32
    %0 = arith.cmpi eq, %arg2, %c0_i32 : i32
    %1 = arith.extui %0 : i1 to i32
    %c0_i32_0 = arith.constant 0 : i32
    %2 = arith.cmpi ne, %1, %c0_i32_0 : i32
    scf.if %2 {
      %cst_70 = arith.constant 0.000000e+00 : f32
      %106 = vector.broadcast %cst_70 : f32 to vector<16x32xf32>
      %c0_71 = arith.constant 0 : index
      %c0_72 = arith.constant 0 : index
      %107 = vector.load %arg11[%c0_71, %c0_72] : memref<16x32xf32, #tpu.memory_space<vmem>>, vector<16x32xf32>
      tpu.vector_store %arg11[%c0_71, %c0_72], %106 {strides = array<i32>} : memref<16x32xf32, #tpu.memory_space<vmem>>, vector<16x32xf32>,
      %cst_73 = arith.constant 0.000000e+00 : f32
      %108 = vector.broadcast %cst_73 : f32 to vector<16x32xf32>
      %c0_74 = arith.constant 0 : index
      %c0_75 = arith.constant 0 : index
      %109 = vector.load %arg12[%c0_74, %c0_75] : memref<16x32xf32, #tpu.memory_space<vmem>>, vector<16x32xf32>
      tpu.vector_store %arg12[%c0_74, %c0_75], %108 {strides = array<i32>} : memref<16x32xf32, #tpu.memory_space<vmem>>, vector<16x32xf32>,
      %cst_76 = arith.constant 0.000000e+00 : f32
      %110 = vector.broadcast %cst_76 : f32 to vector<16x32xf32>
      %c0_77 = arith.constant 0 : index
      %c0_78 = arith.constant 0 : index
      %111 = vector.load %arg13[%c0_77, %c0_78] : memref<16x32xf32, #tpu.memory_space<vmem>>, vector<16x32xf32>
      tpu.vector_store %arg13[%c0_77, %c0_78], %110 {strides = array<i32>} : memref<16x32xf32, #tpu.memory_space<vmem>>, vector<16x32xf32>,
    } else {
    }
    %c0 = arith.constant 0 : index
    %c0_1 = arith.constant 0 : index
    %3 = vector.load %arg3[%c0, %c0_1] : memref<16x32xbf16, #tpu.memory_space<vmem>>, vector<16x32xbf16>
    %c0_2 = arith.constant 0 : index
    %c0_3 = arith.constant 0 : index
    %4 = vector.load %arg5[%c0_2, %c0_3] : memref<16x4xf32, #tpu.memory_space<vmem>>, vector<16x4xf32>
    %c0_4 = arith.constant 0 : index
    %c0_5 = arith.constant 0 : index
    %5 = vector.load %arg6[%c0_4, %c0_5] : memref<16x4xf32, #tpu.memory_space<vmem>>, vector<16x4xf32>
    %c0_6 = arith.constant 0 : index
    %c0_7 = arith.constant 0 : index
    %6 = vector.load %arg7[%c0_6, %c0_7] : memref<16x4xf32, #tpu.memory_space<vmem>>, vector<16x4xf32>
    %c0_8 = arith.constant 0 : index
    %c0_9 = arith.constant 0 : index
    %c0_10 = arith.constant 0 : index
    %7 = vector.load %arg4[%c0_8, %c0_9, %c0_10] : memref<4x32x96xbf16, #tpu.memory_space<vmem>>, vector<1x32x96xbf16>
    %8 = vector.shape_cast %7 : vector<1x32x96xbf16> to vector<32x96xbf16>
    %cst = arith.constant dense<0.000000e+00> : vector<16x96xf32>
    %9 = tpu.matmul %3, %8, %cst {dimension_numbers = #tpu.dot_dimension_numbers<[1], [0], [0], [1], [0, 0, 1, 1], [], []>} : vector<16x32xbf16>, vector<32x96xbf16>, vector<16x96xf32> -> vector<16x96xf32>
    %c0_11 = arith.constant 0 : index
    %c0_12 = arith.constant 0 : index
    %10 = vector.load %arg11[%c0_11, %c0_12] : memref<16x32xf32, #tpu.memory_space<vmem>>, vector<16x32xf32>
    %11 = vector.extract_strided_slice %4 {offsets = [0, 0], sizes = [16, 1], strides = [1, 1]} : vector<16x4xf32> to vector<16x1xf32>
    %12 = vector.extract_strided_slice %9 {offsets = [0, 0], sizes = [16, 32], strides = [1, 1]} : vector<16x96xf32> to vector<16x32xf32>
    %13 = vector.broadcast %11 : vector<16x1xf32> to vector<16x32xf32>
    %14 = arith.mulf %13, %12 : vector<16x32xf32>
    %15 = arith.addf %10, %14 : vector<16x32xf32>
    %c0_13 = arith.constant 0 : index
    %c0_14 = arith.constant 0 : index
    %16 = vector.load %arg11[%c0_13, %c0_14] : memref<16x32xf32, #tpu.memory_space<vmem>>, vector<16x32xf32>
    tpu.vector_store %arg11[%c0_13, %c0_14], %15 {strides = array<i32>} : memref<16x32xf32, #tpu.memory_space<vmem>>, vector<16x32xf32>,
    %c0_15 = arith.constant 0 : index
    %c0_16 = arith.constant 0 : index
    %17 = vector.load %arg12[%c0_15, %c0_16] : memref<16x32xf32, #tpu.memory_space<vmem>>, vector<16x32xf32>
    %18 = vector.extract_strided_slice %5 {offsets = [0, 0], sizes = [16, 1], strides = [1, 1]} : vector<16x4xf32> to vector<16x1xf32>
    %19 = vector.extract_strided_slice %9 {offsets = [0, 32], sizes = [16, 32], strides = [1, 1]} : vector<16x96xf32> to vector<16x32xf32>
    %20 = vector.broadcast %18 : vector<16x1xf32> to vector<16x32xf32>
    %21 = arith.mulf %20, %19 : vector<16x32xf32>
    %22 = arith.addf %17, %21 : vector<16x32xf32>
    %c0_17 = arith.constant 0 : index
    %c0_18 = arith.constant 0 : index
    %23 = vector.load %arg12[%c0_17, %c0_18] : memref<16x32xf32, #tpu.memory_space<vmem>>, vector<16x32xf32>
    tpu.vector_store %arg12[%c0_17, %c0_18], %22 {strides = array<i32>} : memref<16x32xf32, #tpu.memory_space<vmem>>, vector<16x32xf32>,
    %c0_19 = arith.constant 0 : index
    %c0_20 = arith.constant 0 : index
    %24 = vector.load %arg13[%c0_19, %c0_20] : memref<16x32xf32, #tpu.memory_space<vmem>>, vector<16x32xf32>
    %25 = vector.extract_strided_slice %6 {offsets = [0, 0], sizes = [16, 1], strides = [1, 1]} : vector<16x4xf32> to vector<16x1xf32>
    %26 = vector.extract_strided_slice %9 {offsets = [0, 64], sizes = [16, 32], strides = [1, 1]} : vector<16x96xf32> to vector<16x32xf32>
    %27 = vector.broadcast %25 : vector<16x1xf32> to vector<16x32xf32>
    %28 = arith.mulf %27, %26 : vector<16x32xf32>
    %29 = arith.addf %24, %28 : vector<16x32xf32>
    %c0_21 = arith.constant 0 : index
    %c0_22 = arith.constant 0 : index
    %30 = vector.load %arg13[%c0_21, %c0_22] : memref<16x32xf32, #tpu.memory_space<vmem>>, vector<16x32xf32>
    tpu.vector_store %arg13[%c0_21, %c0_22], %29 {strides = array<i32>} : memref<16x32xf32, #tpu.memory_space<vmem>>, vector<16x32xf32>,
    %c1 = arith.constant 1 : index
    %c0_23 = arith.constant 0 : index
    %c0_24 = arith.constant 0 : index
    %31 = vector.load %arg4[%c1, %c0_23, %c0_24] : memref<4x32x96xbf16, #tpu.memory_space<vmem>>, vector<1x32x96xbf16>
    %32 = vector.shape_cast %31 : vector<1x32x96xbf16> to vector<32x96xbf16>
    %cst_25 = arith.constant dense<0.000000e+00> : vector<16x96xf32>
    %33 = tpu.matmul %3, %32, %cst_25 {dimension_numbers = #tpu.dot_dimension_numbers<[1], [0], [0], [1], [0, 0, 1, 1], [], []>} : vector<16x32xbf16>, vector<32x96xbf16>, vector<16x96xf32> -> vector<16x96xf32>
    %c0_26 = arith.constant 0 : index
    %c0_27 = arith.constant 0 : index
    %34 = vector.load %arg11[%c0_26, %c0_27] : memref<16x32xf32, #tpu.memory_space<vmem>>, vector<16x32xf32>
    %35 = vector.extract_strided_slice %4 {offsets = [0, 1], sizes = [16, 1], strides = [1, 1]} : vector<16x4xf32> to vector<16x1xf32>
    %36 = vector.extract_strided_slice %33 {offsets = [0, 0], sizes = [16, 32], strides = [1, 1]} : vector<16x96xf32> to vector<16x32xf32>
    %37 = vector.broadcast %35 : vector<16x1xf32> to vector<16x32xf32>
    %38 = arith.mulf %37, %36 : vector<16x32xf32>
    %39 = arith.addf %34, %38 : vector<16x32xf32>
    %c0_28 = arith.constant 0 : index
    %c0_29 = arith.constant 0 : index
    %40 = vector.load %arg11[%c0_28, %c0_29] : memref<16x32xf32, #tpu.memory_space<vmem>>, vector<16x32xf32>
    tpu.vector_store %arg11[%c0_28, %c0_29], %39 {strides = array<i32>} : memref<16x32xf32, #tpu.memory_space<vmem>>, vector<16x32xf32>,
    %c0_30 = arith.constant 0 : index
    %c0_31 = arith.constant 0 : index
    %41 = vector.load %arg12[%c0_30, %c0_31] : memref<16x32xf32, #tpu.memory_space<vmem>>, vector<16x32xf32>
    %42 = vector.extract_strided_slice %5 {offsets = [0, 1], sizes = [16, 1], strides = [1, 1]} : vector<16x4xf32> to vector<16x1xf32>
    %43 = vector.extract_strided_slice %33 {offsets = [0, 32], sizes = [16, 32], strides = [1, 1]} : vector<16x96xf32> to vector<16x32xf32>
    %44 = vector.broadcast %42 : vector<16x1xf32> to vector<16x32xf32>
    %45 = arith.mulf %44, %43 : vector<16x32xf32>
    %46 = arith.addf %41, %45 : vector<16x32xf32>
    %c0_32 = arith.constant 0 : index
    %c0_33 = arith.constant 0 : index
    %47 = vector.load %arg12[%c0_32, %c0_33] : memref<16x32xf32, #tpu.memory_space<vmem>>, vector<16x32xf32>
    tpu.vector_store %arg12[%c0_32, %c0_33], %46 {strides = array<i32>} : memref<16x32xf32, #tpu.memory_space<vmem>>, vector<16x32xf32>,
    %c0_34 = arith.constant 0 : index
    %c0_35 = arith.constant 0 : index
    %48 = vector.load %arg13[%c0_34, %c0_35] : memref<16x32xf32, #tpu.memory_space<vmem>>, vector<16x32xf32>
    %49 = vector.extract_strided_slice %6 {offsets = [0, 1], sizes = [16, 1], strides = [1, 1]} : vector<16x4xf32> to vector<16x1xf32>
    %50 = vector.extract_strided_slice %33 {offsets = [0, 64], sizes = [16, 32], strides = [1, 1]} : vector<16x96xf32> to vector<16x32xf32>
    %51 = vector.broadcast %49 : vector<16x1xf32> to vector<16x32xf32>
    %52 = arith.mulf %51, %50 : vector<16x32xf32>
    %53 = arith.addf %48, %52 : vector<16x32xf32>
    %c0_36 = arith.constant 0 : index
    %c0_37 = arith.constant 0 : index
    %54 = vector.load %arg13[%c0_36, %c0_37] : memref<16x32xf32, #tpu.memory_space<vmem>>, vector<16x32xf32>
    tpu.vector_store %arg13[%c0_36, %c0_37], %53 {strides = array<i32>} : memref<16x32xf32, #tpu.memory_space<vmem>>, vector<16x32xf32>,
    %c2 = arith.constant 2 : index
    %c0_38 = arith.constant 0 : index
    %c0_39 = arith.constant 0 : index
    %55 = vector.load %arg4[%c2, %c0_38, %c0_39] : memref<4x32x96xbf16, #tpu.memory_space<vmem>>, vector<1x32x96xbf16>
    %56 = vector.shape_cast %55 : vector<1x32x96xbf16> to vector<32x96xbf16>
    %cst_40 = arith.constant dense<0.000000e+00> : vector<16x96xf32>
    %57 = tpu.matmul %3, %56, %cst_40 {dimension_numbers = #tpu.dot_dimension_numbers<[1], [0], [0], [1], [0, 0, 1, 1], [], []>} : vector<16x32xbf16>, vector<32x96xbf16>, vector<16x96xf32> -> vector<16x96xf32>
    %c0_41 = arith.constant 0 : index
    %c0_42 = arith.constant 0 : index
    %58 = vector.load %arg11[%c0_41, %c0_42] : memref<16x32xf32, #tpu.memory_space<vmem>>, vector<16x32xf32>
    %59 = vector.extract_strided_slice %4 {offsets = [0, 2], sizes = [16, 1], strides = [1, 1]} : vector<16x4xf32> to vector<16x1xf32>
    %60 = vector.extract_strided_slice %57 {offsets = [0, 0], sizes = [16, 32], strides = [1, 1]} : vector<16x96xf32> to vector<16x32xf32>
    %61 = vector.broadcast %59 : vector<16x1xf32> to vector<16x32xf32>
    %62 = arith.mulf %61, %60 : vector<16x32xf32>
    %63 = arith.addf %58, %62 : vector<16x32xf32>
    %c0_43 = arith.constant 0 : index
    %c0_44 = arith.constant 0 : index
    %64 = vector.load %arg11[%c0_43, %c0_44] : memref<16x32xf32, #tpu.memory_space<vmem>>, vector<16x32xf32>
    tpu.vector_store %arg11[%c0_43, %c0_44], %63 {strides = array<i32>} : memref<16x32xf32, #tpu.memory_space<vmem>>, vector<16x32xf32>,
    %c0_45 = arith.constant 0 : index
    %c0_46 = arith.constant 0 : index
    %65 = vector.load %arg12[%c0_45, %c0_46] : memref<16x32xf32, #tpu.memory_space<vmem>>, vector<16x32xf32>
    %66 = vector.extract_strided_slice %5 {offsets = [0, 2], sizes = [16, 1], strides = [1, 1]} : vector<16x4xf32> to vector<16x1xf32>
    %67 = vector.extract_strided_slice %57 {offsets = [0, 32], sizes = [16, 32], strides = [1, 1]} : vector<16x96xf32> to vector<16x32xf32>
    %68 = vector.broadcast %66 : vector<16x1xf32> to vector<16x32xf32>
    %69 = arith.mulf %68, %67 : vector<16x32xf32>
    %70 = arith.addf %65, %69 : vector<16x32xf32>
    %c0_47 = arith.constant 0 : index
    %c0_48 = arith.constant 0 : index
    %71 = vector.load %arg12[%c0_47, %c0_48] : memref<16x32xf32, #tpu.memory_space<vmem>>, vector<16x32xf32>
    tpu.vector_store %arg12[%c0_47, %c0_48], %70 {strides = array<i32>} : memref<16x32xf32, #tpu.memory_space<vmem>>, vector<16x32xf32>,
    %c0_49 = arith.constant 0 : index
    %c0_50 = arith.constant 0 : index
    %72 = vector.load %arg13[%c0_49, %c0_50] : memref<16x32xf32, #tpu.memory_space<vmem>>, vector<16x32xf32>
    %73 = vector.extract_strided_slice %6 {offsets = [0, 2], sizes = [16, 1], strides = [1, 1]} : vector<16x4xf32> to vector<16x1xf32>
    %74 = vector.extract_strided_slice %57 {offsets = [0, 64], sizes = [16, 32], strides = [1, 1]} : vector<16x96xf32> to vector<16x32xf32>
    %75 = vector.broadcast %73 : vector<16x1xf32> to vector<16x32xf32>
    %76 = arith.mulf %75, %74 : vector<16x32xf32>
    %77 = arith.addf %72, %76 : vector<16x32xf32>
    %c0_51 = arith.constant 0 : index
    %c0_52 = arith.constant 0 : index
    %78 = vector.load %arg13[%c0_51, %c0_52] : memref<16x32xf32, #tpu.memory_space<vmem>>, vector<16x32xf32>
    tpu.vector_store %arg13[%c0_51, %c0_52], %77 {strides = array<i32>} : memref<16x32xf32, #tpu.memory_space<vmem>>, vector<16x32xf32>,
    %c3 = arith.constant 3 : index
    %c0_53 = arith.constant 0 : index
    %c0_54 = arith.constant 0 : index
    %79 = vector.load %arg4[%c3, %c0_53, %c0_54] : memref<4x32x96xbf16, #tpu.memory_space<vmem>>, vector<1x32x96xbf16>
    %80 = vector.shape_cast %79 : vector<1x32x96xbf16> to vector<32x96xbf16>
    %cst_55 = arith.constant dense<0.000000e+00> : vector<16x96xf32>
    %81 = tpu.matmul %3, %80, %cst_55 {dimension_numbers = #tpu.dot_dimension_numbers<[1], [0], [0], [1], [0, 0, 1, 1], [], []>} : vector<16x32xbf16>, vector<32x96xbf16>, vector<16x96xf32> -> vector<16x96xf32>
    %c0_56 = arith.constant 0 : index
    %c0_57 = arith.constant 0 : index
    %82 = vector.load %arg11[%c0_56, %c0_57] : memref<16x32xf32, #tpu.memory_space<vmem>>, vector<16x32xf32>
    %83 = vector.extract_strided_slice %4 {offsets = [0, 3], sizes = [16, 1], strides = [1, 1]} : vector<16x4xf32> to vector<16x1xf32>
    %84 = vector.extract_strided_slice %81 {offsets = [0, 0], sizes = [16, 32], strides = [1, 1]} : vector<16x96xf32> to vector<16x32xf32>
    %85 = vector.broadcast %83 : vector<16x1xf32> to vector<16x32xf32>
    %86 = arith.mulf %85, %84 : vector<16x32xf32>
    %87 = arith.addf %82, %86 : vector<16x32xf32>
    %c0_58 = arith.constant 0 : index
    %c0_59 = arith.constant 0 : index
    %88 = vector.load %arg11[%c0_58, %c0_59] : memref<16x32xf32, #tpu.memory_space<vmem>>, vector<16x32xf32>
    tpu.vector_store %arg11[%c0_58, %c0_59], %87 {strides = array<i32>} : memref<16x32xf32, #tpu.memory_space<vmem>>, vector<16x32xf32>,
    %c0_60 = arith.constant 0 : index
    %c0_61 = arith.constant 0 : index
    %89 = vector.load %arg12[%c0_60, %c0_61] : memref<16x32xf32, #tpu.memory_space<vmem>>, vector<16x32xf32>
    %90 = vector.extract_strided_slice %5 {offsets = [0, 3], sizes = [16, 1], strides = [1, 1]} : vector<16x4xf32> to vector<16x1xf32>
    %91 = vector.extract_strided_slice %81 {offsets = [0, 32], sizes = [16, 32], strides = [1, 1]} : vector<16x96xf32> to vector<16x32xf32>
    %92 = vector.broadcast %90 : vector<16x1xf32> to vector<16x32xf32>
    %93 = arith.mulf %92, %91 : vector<16x32xf32>
    %94 = arith.addf %89, %93 : vector<16x32xf32>
    %c0_62 = arith.constant 0 : index
    %c0_63 = arith.constant 0 : index
    %95 = vector.load %arg12[%c0_62, %c0_63] : memref<16x32xf32, #tpu.memory_space<vmem>>, vector<16x32xf32>
    tpu.vector_store %arg12[%c0_62, %c0_63], %94 {strides = array<i32>} : memref<16x32xf32, #tpu.memory_space<vmem>>, vector<16x32xf32>,
    %c0_64 = arith.constant 0 : index
    %c0_65 = arith.constant 0 : index
    %96 = vector.load %arg13[%c0_64, %c0_65] : memref<16x32xf32, #tpu.memory_space<vmem>>, vector<16x32xf32>
    %97 = vector.extract_strided_slice %6 {offsets = [0, 3], sizes = [16, 1], strides = [1, 1]} : vector<16x4xf32> to vector<16x1xf32>
    %98 = vector.extract_strided_slice %81 {offsets = [0, 64], sizes = [16, 32], strides = [1, 1]} : vector<16x96xf32> to vector<16x32xf32>
    %99 = vector.broadcast %97 : vector<16x1xf32> to vector<16x32xf32>
    %100 = arith.mulf %99, %98 : vector<16x32xf32>
    %101 = arith.addf %96, %100 : vector<16x32xf32>
    %c0_66 = arith.constant 0 : index
    %c0_67 = arith.constant 0 : index
    %102 = vector.load %arg13[%c0_66, %c0_67] : memref<16x32xf32, #tpu.memory_space<vmem>>, vector<16x32xf32>
    tpu.vector_store %arg13[%c0_66, %c0_67], %101 {strides = array<i32>} : memref<16x32xf32, #tpu.memory_space<vmem>>, vector<16x32xf32>,
    %c0_i32_68 = arith.constant 0 : i32
    %103 = arith.cmpi eq, %arg2, %c0_i32_68 : i32
    %104 = arith.extui %103 : i1 to i32
    %c0_i32_69 = arith.constant 0 : i32
    %105 = arith.cmpi ne, %104, %c0_i32_69 : i32
    scf.if %105 {
      %c0_70 = arith.constant 0 : index
      %c0_71 = arith.constant 0 : index
      %106 = vector.load %arg11[%c0_70, %c0_71] : memref<16x32xf32, #tpu.memory_space<vmem>>, vector<16x32xf32>
      %107 = arith.truncf %106 : vector<16x32xf32> to vector<16x32xbf16>
      %c0_72 = arith.constant 0 : index
      %c0_73 = arith.constant 0 : index
      %108 = vector.load %arg8[%c0_72, %c0_73] : memref<16x32xbf16, #tpu.memory_space<vmem>>, vector<16x32xbf16>
      tpu.vector_store %arg8[%c0_72, %c0_73], %107 {strides = array<i32>} : memref<16x32xbf16, #tpu.memory_space<vmem>>, vector<16x32xbf16>,
      %c0_74 = arith.constant 0 : index
      %c0_75 = arith.constant 0 : index
      %109 = vector.load %arg12[%c0_74, %c0_75] : memref<16x32xf32, #tpu.memory_space<vmem>>, vector<16x32xf32>
      %110 = arith.truncf %109 : vector<16x32xf32> to vector<16x32xbf16>
      %c0_76 = arith.constant 0 : index
      %c0_77 = arith.constant 0 : index
      %111 = vector.load %arg9[%c0_76, %c0_77] : memref<16x32xbf16, #tpu.memory_space<vmem>>, vector<16x32xbf16>
      tpu.vector_store %arg9[%c0_76, %c0_77], %110 {strides = array<i32>} : memref<16x32xbf16, #tpu.memory_space<vmem>>, vector<16x32xbf16>,
      %c0_78 = arith.constant 0 : index
      %c0_79 = arith.constant 0 : index
      %112 = vector.load %arg13[%c0_78, %c0_79] : memref<16x32xf32, #tpu.memory_space<vmem>>, vector<16x32xf32>
      %113 = arith.truncf %112 : vector<16x32xf32> to vector<16x32xbf16>
      %c0_80 = arith.constant 0 : index
      %c0_81 = arith.constant 0 : index
      %114 = vector.load %arg10[%c0_80, %c0_81] : memref<16x32xbf16, #tpu.memory_space<vmem>>, vector<16x32xbf16>
      tpu.vector_store %arg10[%c0_80, %c0_81], %113 {strides = array<i32>} : memref<16x32xbf16, #tpu.memory_space<vmem>>, vector<16x32xbf16>,
    } else {
    }
    return
  }
  func.func @transform_0(%arg0: i32, %arg1: i32, %arg2: i32) -> (i32, i32) {
    %c0_i32 = arith.constant 0 : i32
    return %arg0, %arg2 : i32, i32
  }
  func.func @transform_1(%arg0: i32, %arg1: i32, %arg2: i32) -> (i32, i32, i32) {
    %c0_i32 = arith.constant 0 : i32
    %c0_i32_0 = arith.constant 0 : i32
    return %c0_i32, %arg2, %arg1 : i32, i32, i32
  }
  func.func @transform_2(%arg0: i32, %arg1: i32, %arg2: i32) -> (i32, i32) {
    %c0_i32 = arith.constant 0 : i32
    %c0_i32_0 = arith.constant 0 : i32
    return %arg0, %c0_i32 : i32, i32
  }
  func.func @transform_3(%arg0: i32, %arg1: i32, %arg2: i32) -> (i32, i32) {
    %c0_i32 = arith.constant 0 : i32
    %c0_i32_0 = arith.constant 0 : i32
    return %arg0, %c0_i32 : i32, i32
  }
  func.func @transform_4(%arg0: i32, %arg1: i32, %arg2: i32) -> (i32, i32) {
    %c0_i32 = arith.constant 0 : i32
    %c0_i32_0 = arith.constant 0 : i32
    return %arg0, %c0_i32 : i32, i32
  }
  func.func @transform_5(%arg0: i32, %arg1: i32, %arg2: i32) -> (i32, i32) {
    %c0_i32 = arith.constant 0 : i32
    return %arg0, %arg1 : i32, i32
  }
  func.func @transform_6(%arg0: i32, %arg1: i32, %arg2: i32) -> (i32, i32) {
    %c0_i32 = arith.constant 0 : i32
    return %arg0, %arg1 : i32, i32
  }
  func.func @transform_7(%arg0: i32, %arg1: i32, %arg2: i32) -> (i32, i32) {
    %c0_i32 = arith.constant 0 : i32
    return %arg0, %arg1 : i32, i32
  }
}

module attributes {stable_mosaic.version = 11 : i64} {
  func.func @flash_attn_kernel(%arg0: i32, %arg1: i32, %arg2: i32, %arg3: i32, %arg4: memref<1x1x8x8xbf16, #tpu.memory_space<vmem>>, %arg5: memref<1x1x8x8xbf16, #tpu.memory_space<vmem>>, %arg6: memref<1x1x8x8xbf16, #tpu.memory_space<vmem>>, %arg7: memref<1x1x8x8xbf16, #tpu.memory_space<vmem>>, %arg8: memref<1x8x1xf32, #tpu.memory_space<vmem>>, %arg9: memref<1x8x1xf32, #tpu.memory_space<vmem>>, %arg10: memref<1x8x8xf32, #tpu.memory_space<vmem>>) attributes {dimension_semantics = [#tpu.dimension_semantics<parallel>, #tpu.dimension_semantics<parallel>, #tpu.dimension_semantics<parallel>, #tpu.dimension_semantics<arbitrary>], iteration_bounds = array<i64: 2, 4, 1, 1>, scalar_prefetch = 0 : i64, scratch_operands = 3 : i64, tpu.core_type = #tpu.core_type<tc>, window_params = [{transform_indices = @transform_0, window_bounds = array<i64: 1, 1, 8, 8>}, {transform_indices = @transform_1, window_bounds = array<i64: 1, 1, 8, 8>}, {transform_indices = @transform_2, window_bounds = array<i64: 1, 1, 8, 8>}, {transform_indices = @transform_3, window_bounds = array<i64: 1, 1, 8, 8>}]} {
    %c0_i32 = arith.constant 0 : i32
    %0 = arith.cmpi eq, %arg3, %c0_i32 : i32
    %1 = arith.extui %0 : i1 to i32
    %c0_i32_0 = arith.constant 0 : i32
    %2 = arith.cmpi ne, %1, %c0_i32_0 : i32
    scf.if %2 {
      %cst_35 = arith.constant -1.000000e+30 : f32
      %36 = vector.broadcast %cst_35 : f32 to vector<1x8x1xf32>
      %c0_36 = arith.constant 0 : index
      %c0_37 = arith.constant 0 : index
      %c0_38 = arith.constant 0 : index
      %37 = vector.load %arg8[%c0_36, %c0_37, %c0_38] : memref<1x8x1xf32, #tpu.memory_space<vmem>>, vector<1x8x1xf32>
      tpu.vector_store %arg8[%c0_36, %c0_37, %c0_38], %36 {strides = array<i32>} : memref<1x8x1xf32, #tpu.memory_space<vmem>>, vector<1x8x1xf32>,
      %cst_39 = arith.constant 0.000000e+00 : f32
      %38 = vector.broadcast %cst_39 : f32 to vector<1x8x1xf32>
      %c0_40 = arith.constant 0 : index
      %c0_41 = arith.constant 0 : index
      %c0_42 = arith.constant 0 : index
      %39 = vector.load %arg9[%c0_40, %c0_41, %c0_42] : memref<1x8x1xf32, #tpu.memory_space<vmem>>, vector<1x8x1xf32>
      tpu.vector_store %arg9[%c0_40, %c0_41, %c0_42], %38 {strides = array<i32>} : memref<1x8x1xf32, #tpu.memory_space<vmem>>, vector<1x8x1xf32>,
      %cst_43 = arith.constant 0.000000e+00 : f32
      %40 = vector.broadcast %cst_43 : f32 to vector<1x8x8xf32>
      %c0_44 = arith.constant 0 : index
      %c0_45 = arith.constant 0 : index
      %c0_46 = arith.constant 0 : index
      %41 = vector.load %arg10[%c0_44, %c0_45, %c0_46] : memref<1x8x8xf32, #tpu.memory_space<vmem>>, vector<1x8x8xf32>
      tpu.vector_store %arg10[%c0_44, %c0_45, %c0_46], %40 {strides = array<i32>} : memref<1x8x8xf32, #tpu.memory_space<vmem>>, vector<1x8x8xf32>,
    } else {
    }
    %c0 = arith.constant 0 : index
    %c0_1 = arith.constant 0 : index
    %c0_2 = arith.constant 0 : index
    %c0_3 = arith.constant 0 : index
    %3 = vector.load %arg4[%c0, %c0_1, %c0_2, %c0_3] : memref<1x1x8x8xbf16, #tpu.memory_space<vmem>>, vector<1x1x8x8xbf16>
    %4 = vector.shape_cast %3 : vector<1x1x8x8xbf16> to vector<1x8x8xbf16>
    %c0_4 = arith.constant 0 : index
    %c0_5 = arith.constant 0 : index
    %c0_6 = arith.constant 0 : index
    %c0_7 = arith.constant 0 : index
    %5 = vector.load %arg5[%c0_4, %c0_5, %c0_6, %c0_7] : memref<1x1x8x8xbf16, #tpu.memory_space<vmem>>, vector<1x1x8x8xbf16>
    %6 = vector.shape_cast %5 : vector<1x1x8x8xbf16> to vector<1x8x8xbf16>
    %c0_8 = arith.constant 0 : index
    %c0_9 = arith.constant 0 : index
    %c0_10 = arith.constant 0 : index
    %c0_11 = arith.constant 0 : index
    %7 = vector.load %arg6[%c0_8, %c0_9, %c0_10, %c0_11] : memref<1x1x8x8xbf16, #tpu.memory_space<vmem>>, vector<1x1x8x8xbf16>
    %8 = vector.shape_cast %7 : vector<1x1x8x8xbf16> to vector<1x8x8xbf16>
    "tpu.trace_start"() <{level = 10 : i32, message = "hqd,hkd->hqk"}> : () -> ()
    %cst = arith.constant dense<0.000000e+00> : vector<1x8x8xf32>
    %9 = tpu.matmul %4, %6, %cst {dimension_numbers = #tpu.dot_dimension_numbers<[2], [2], [1], [1], [0, 0, 0, 1, 1, 1], [0], [0]>} : vector<1x8x8xbf16>, vector<1x8x8xbf16>, vector<1x8x8xf32> -> vector<1x8x8xf32>
    "tpu.trace_stop"() : () -> ()
    %c0_12 = arith.constant 0 : index
    %c0_13 = arith.constant 0 : index
    %c0_14 = arith.constant 0 : index
    %10 = vector.load %arg8[%c0_12, %c0_13, %c0_14] : memref<1x8x1xf32, #tpu.memory_space<vmem>>, vector<1x8x1xf32>
    %cst_15 = arith.constant dense<0xFF800000> : vector<1x8xf32>
    %11 = vector.multi_reduction <maximumf>, %9, %cst_15 [2] : vector<1x8x8xf32> to vector<1x8xf32>
    %12 = vector.shape_cast %11 : vector<1x8xf32> to vector<1x8x1xf32>
    %13 = arith.maximumf %10, %12 : vector<1x8x1xf32>
    %14 = arith.subf %10, %13 : vector<1x8x1xf32>
    %15 = math.exp %14 : vector<1x8x1xf32>
    %16 = vector.broadcast %13 : vector<1x8x1xf32> to vector<1x8x8xf32>
    %17 = arith.subf %9, %16 : vector<1x8x8xf32>
    %18 = math.exp %17 : vector<1x8x8xf32>
    %c0_16 = arith.constant 0 : index
    %c0_17 = arith.constant 0 : index
    %c0_18 = arith.constant 0 : index
    %19 = vector.load %arg9[%c0_16, %c0_17, %c0_18] : memref<1x8x1xf32, #tpu.memory_space<vmem>>, vector<1x8x1xf32>
    %20 = arith.mulf %15, %19 : vector<1x8x1xf32>
    %cst_19 = arith.constant dense<0.000000e+00> : vector<1x8xf32>
    %21 = vector.multi_reduction <add>, %18, %cst_19 [2] : vector<1x8x8xf32> to vector<1x8xf32>
    %22 = vector.shape_cast %21 : vector<1x8xf32> to vector<1x8x1xf32>
    %23 = arith.addf %20, %22 : vector<1x8x1xf32>
    %c0_20 = arith.constant 0 : index
    %c0_21 = arith.constant 0 : index
    %c0_22 = arith.constant 0 : index
    %24 = vector.load %arg9[%c0_20, %c0_21, %c0_22] : memref<1x8x1xf32, #tpu.memory_space<vmem>>, vector<1x8x1xf32>
    tpu.vector_store %arg9[%c0_20, %c0_21, %c0_22], %23 {strides = array<i32>} : memref<1x8x1xf32, #tpu.memory_space<vmem>>, vector<1x8x1xf32>,
    %c0_23 = arith.constant 0 : index
    %c0_24 = arith.constant 0 : index
    %c0_25 = arith.constant 0 : index
    %25 = vector.load %arg10[%c0_23, %c0_24, %c0_25] : memref<1x8x8xf32, #tpu.memory_space<vmem>>, vector<1x8x8xf32>
    %26 = vector.broadcast %15 : vector<1x8x1xf32> to vector<1x8x8xf32>
    %27 = arith.mulf %26, %25 : vector<1x8x8xf32>
    %28 = arith.truncf %18 : vector<1x8x8xf32> to vector<1x8x8xbf16>
    "tpu.trace_start"() <{level = 10 : i32, message = "hqk,hkd->hqd"}> : () -> ()
    %cst_26 = arith.constant dense<0.000000e+00> : vector<1x8x8xf32>
    %29 = tpu.matmul %28, %8, %cst_26 {dimension_numbers = #tpu.dot_dimension_numbers<[2], [1], [1], [2], [0, 0, 0, 1, 1, 2], [0], [0]>} : vector<1x8x8xbf16>, vector<1x8x8xbf16>, vector<1x8x8xf32> -> vector<1x8x8xf32>
    "tpu.trace_stop"() : () -> ()
    %30 = arith.addf %27, %29 : vector<1x8x8xf32>
    %c0_27 = arith.constant 0 : index
    %c0_28 = arith.constant 0 : index
    %c0_29 = arith.constant 0 : index
    %31 = vector.load %arg10[%c0_27, %c0_28, %c0_29] : memref<1x8x8xf32, #tpu.memory_space<vmem>>, vector<1x8x8xf32>
    tpu.vector_store %arg10[%c0_27, %c0_28, %c0_29], %30 {strides = array<i32>} : memref<1x8x8xf32, #tpu.memory_space<vmem>>, vector<1x8x8xf32>,
    %c0_30 = arith.constant 0 : index
    %c0_31 = arith.constant 0 : index
    %c0_32 = arith.constant 0 : index
    %32 = vector.load %arg8[%c0_30, %c0_31, %c0_32] : memref<1x8x1xf32, #tpu.memory_space<vmem>>, vector<1x8x1xf32>
    tpu.vector_store %arg8[%c0_30, %c0_31, %c0_32], %13 {strides = array<i32>} : memref<1x8x1xf32, #tpu.memory_space<vmem>>, vector<1x8x1xf32>,
    %c0_i32_33 = arith.constant 0 : i32
    %33 = arith.cmpi eq, %arg3, %c0_i32_33 : i32
    %34 = arith.extui %33 : i1 to i32
    %c0_i32_34 = arith.constant 0 : i32
    %35 = arith.cmpi ne, %34, %c0_i32_34 : i32
    scf.if %35 {
      %c0_35 = arith.constant 0 : index
      %c0_36 = arith.constant 0 : index
      %c0_37 = arith.constant 0 : index
      %36 = vector.load %arg9[%c0_35, %c0_36, %c0_37] : memref<1x8x1xf32, #tpu.memory_space<vmem>>, vector<1x8x1xf32>
      %37 = tpu.reciprocal %36 {approx = true} : vector<1x8x1xf32> -> vector<1x8x1xf32>
      %c0_38 = arith.constant 0 : index
      %c0_39 = arith.constant 0 : index
      %c0_40 = arith.constant 0 : index
      %38 = vector.load %arg10[%c0_38, %c0_39, %c0_40] : memref<1x8x8xf32, #tpu.memory_space<vmem>>, vector<1x8x8xf32>
      %39 = vector.broadcast %37 : vector<1x8x1xf32> to vector<1x8x8xf32>
      %40 = arith.mulf %38, %39 : vector<1x8x8xf32>
      %41 = arith.truncf %40 : vector<1x8x8xf32> to vector<1x8x8xbf16>
      %c0_41 = arith.constant 0 : index
      %c0_42 = arith.constant 0 : index
      %c0_43 = arith.constant 0 : index
      %c0_44 = arith.constant 0 : index
      %42 = vector.load %arg7[%c0_41, %c0_42, %c0_43, %c0_44] : memref<1x1x8x8xbf16, #tpu.memory_space<vmem>>, vector<1x1x8x8xbf16>
      %43 = vector.shape_cast %42 : vector<1x1x8x8xbf16> to vector<1x8x8xbf16>
      %44 = vector.shape_cast %41 : vector<1x8x8xbf16> to vector<1x1x8x8xbf16>
      tpu.vector_store %arg7[%c0_41, %c0_42, %c0_43, %c0_44], %44 {strides = array<i32>} : memref<1x1x8x8xbf16, #tpu.memory_space<vmem>>, vector<1x1x8x8xbf16>,
    } else {
    }
    return
  }
  func.func @transform_0(%arg0: i32, %arg1: i32, %arg2: i32, %arg3: i32) -> (i32, i32, i32, i32) {
    %c0_i32 = arith.constant 0 : i32
    %c0_i32_0 = arith.constant 0 : i32
    return %arg0, %arg1, %arg2, %c0_i32 : i32, i32, i32, i32
  }
  func.func @transform_1(%arg0: i32, %arg1: i32, %arg2: i32, %arg3: i32) -> (i32, i32, i32, i32) {
    %c0_i32 = arith.constant 0 : i32
    %c0_i32_0 = arith.constant 0 : i32
    return %arg0, %arg1, %arg3, %c0_i32 : i32, i32, i32, i32
  }
  func.func @transform_2(%arg0: i32, %arg1: i32, %arg2: i32, %arg3: i32) -> (i32, i32, i32, i32) {
    %c0_i32 = arith.constant 0 : i32
    %c0_i32_0 = arith.constant 0 : i32
    return %arg0, %arg1, %arg3, %c0_i32 : i32, i32, i32, i32
  }
  func.func @transform_3(%arg0: i32, %arg1: i32, %arg2: i32, %arg3: i32) -> (i32, i32, i32, i32) {
    %c0_i32 = arith.constant 0 : i32
    %c0_i32_0 = arith.constant 0 : i32
    return %arg0, %arg1, %arg2, %c0_i32 : i32, i32, i32, i32
  }
}

module attributes {stable_mosaic.version = 11 : i64} {
  func.func @proj_kernel(%arg0: i32, %arg1: i32, %arg2: i32, %arg3: memref<16x32xbf16, #tpu.memory_space<vmem>>, %arg4: memref<32x32xbf16, #tpu.memory_space<vmem>>, %arg5: memref<1x32xf32, #tpu.memory_space<vmem>>, %arg6: memref<16x32xf32, #tpu.memory_space<vmem>>, %arg7: memref<16x32xf32, #tpu.memory_space<vmem>>) attributes {dimension_semantics = [#tpu.dimension_semantics<parallel>, #tpu.dimension_semantics<parallel>, #tpu.dimension_semantics<arbitrary>], iteration_bounds = array<i64: 1, 1, 1>, scalar_prefetch = 0 : i64, scratch_operands = 1 : i64, tpu.core_type = #tpu.core_type<tc>, window_params = [{transform_indices = @transform_0, window_bounds = array<i64: 16, 32>}, {transform_indices = @transform_1, window_bounds = array<i64: 32, 32>}, {transform_indices = @transform_2, window_bounds = array<i64: 1, 32>}, {transform_indices = @transform_3, window_bounds = array<i64: 16, 32>}]} {
    %c0_i32 = arith.constant 0 : i32
    %0 = arith.cmpi eq, %arg2, %c0_i32 : i32
    %1 = arith.extui %0 : i1 to i32
    %c0_i32_0 = arith.constant 0 : i32
    %2 = arith.cmpi ne, %1, %c0_i32_0 : i32
    scf.if %2 {
      %cst_10 = arith.constant 0.000000e+00 : f32
      %12 = vector.broadcast %cst_10 : f32 to vector<16x32xf32>
      %c0_11 = arith.constant 0 : index
      %c0_12 = arith.constant 0 : index
      %13 = vector.load %arg7[%c0_11, %c0_12] : memref<16x32xf32, #tpu.memory_space<vmem>>, vector<16x32xf32>
      tpu.vector_store %arg7[%c0_11, %c0_12], %12 {strides = array<i32>} : memref<16x32xf32, #tpu.memory_space<vmem>>, vector<16x32xf32>,
    } else {
    }
    %c0 = arith.constant 0 : index
    %c0_1 = arith.constant 0 : index
    %3 = vector.load %arg7[%c0, %c0_1] : memref<16x32xf32, #tpu.memory_space<vmem>>, vector<16x32xf32>
    %c0_2 = arith.constant 0 : index
    %c0_3 = arith.constant 0 : index
    %4 = vector.load %arg3[%c0_2, %c0_3] : memref<16x32xbf16, #tpu.memory_space<vmem>>, vector<16x32xbf16>
    %c0_4 = arith.constant 0 : index
    %c0_5 = arith.constant 0 : index
    %5 = vector.load %arg4[%c0_4, %c0_5] : memref<32x32xbf16, #tpu.memory_space<vmem>>, vector<32x32xbf16>
    %cst = arith.constant dense<0.000000e+00> : vector<16x32xf32>
    %6 = tpu.matmul %4, %5, %cst {dimension_numbers = #tpu.dot_dimension_numbers<[1], [0], [0], [1], [0, 0, 1, 1], [], []>} : vector<16x32xbf16>, vector<32x32xbf16>, vector<16x32xf32> -> vector<16x32xf32>
    %7 = arith.addf %3, %6 : vector<16x32xf32>
    %c0_6 = arith.constant 0 : index
    %c0_7 = arith.constant 0 : index
    %8 = vector.load %arg7[%c0_6, %c0_7] : memref<16x32xf32, #tpu.memory_space<vmem>>, vector<16x32xf32>
    tpu.vector_store %arg7[%c0_6, %c0_7], %7 {strides = array<i32>} : memref<16x32xf32, #tpu.memory_space<vmem>>, vector<16x32xf32>,
    %c0_i32_8 = arith.constant 0 : i32
    %9 = arith.cmpi eq, %arg2, %c0_i32_8 : i32
    %10 = arith.extui %9 : i1 to i32
    %c0_i32_9 = arith.constant 0 : i32
    %11 = arith.cmpi ne, %10, %c0_i32_9 : i32
    scf.if %11 {
      %c0_10 = arith.constant 0 : index
      %c0_11 = arith.constant 0 : index
      %12 = vector.load %arg7[%c0_10, %c0_11] : memref<16x32xf32, #tpu.memory_space<vmem>>, vector<16x32xf32>
      %c0_12 = arith.constant 0 : index
      %c0_13 = arith.constant 0 : index
      %13 = vector.load %arg5[%c0_12, %c0_13] : memref<1x32xf32, #tpu.memory_space<vmem>>, vector<1x32xf32>
      %14 = vector.broadcast %13 : vector<1x32xf32> to vector<16x32xf32>
      %15 = arith.addf %12, %14 : vector<16x32xf32>
      %c0_14 = arith.constant 0 : index
      %c0_15 = arith.constant 0 : index
      %16 = vector.load %arg6[%c0_14, %c0_15] : memref<16x32xf32, #tpu.memory_space<vmem>>, vector<16x32xf32>
      tpu.vector_store %arg6[%c0_14, %c0_15], %15 {strides = array<i32>} : memref<16x32xf32, #tpu.memory_space<vmem>>, vector<16x32xf32>,
    } else {
    }
    return
  }
  func.func @transform_0(%arg0: i32, %arg1: i32, %arg2: i32) -> (i32, i32) {
    %c0_i32 = arith.constant 0 : i32
    return %arg0, %arg2 : i32, i32
  }
  func.func @transform_1(%arg0: i32, %arg1: i32, %arg2: i32) -> (i32, i32) {
    %c0_i32 = arith.constant 0 : i32
    return %arg2, %arg1 : i32, i32
  }
  func.func @transform_2(%arg0: i32, %arg1: i32, %arg2: i32) -> (i32, i32) {
    %c0_i32 = arith.constant 0 : i32
    %c0_i32_0 = arith.constant 0 : i32
    return %c0_i32, %arg1 : i32, i32
  }
  func.func @transform_3(%arg0: i32, %arg1: i32, %arg2: i32) -> (i32, i32) {
    %c0_i32 = arith.constant 0 : i32
    return %arg0, %arg1 : i32, i32
  }
}

</mosaic_0001>

<bundles_post_ra>
// kernel: attention_moe_qkv_forward.4
= control target key start
LH: loop header
LB: loop body
LE: loop exit
PB: predicated region body
PF: predicated region fallthrough
CT: control target
= control target key end

     0   :  { %s772_s12 = smov 0   ;;  %s774_s13 = smov 0   ;;  %s846_s0 = inlined_call_operand.vmem [shape: bf16[2,4,8,8], index: 0, kind: input, shape index: {}]   ;;  %s847_s1 = inlined_call_operand.vmem [shape: bf16[2,4,8,8], index: 1, kind: input, shape index: {}]   ;;  %s848_s2 = inlined_call_operand.vmem [shape: bf16[2,4,8,8], index: 2, kind: input, shape index: {}]   ;;  %s849_s3 = inlined_call_operand.vmem [shape: bf16[2,4,8,8], index: 3, kind: output, shape index: {}]  }
   0x1   :  { %s776_s14 = smov 0   ;;  %s778_s15 = smov 0  }
   0x2   :  { %s780_s16 = smov 0  }
   0x3 LB: > { %s35_s17 = sadd.s32 1, %s738_s14  ;;  %s39_s18 = sadd.s32 1, %s742_s15  ;;  %s746_s16 = sphi %s780_s16, %s13_s16   ;;  %s742_s15 = sphi %s778_s15, %s853_s15   ;;  %s738_s14 = sphi %s776_s14, %s852_s14   ;;  %s734_s13 = sphi %s774_s13, %s851_s13   ;;  %s730_s12 = sphi %s772_s12, %s850_s12  }
   0x4   : > { %p37_p0 = scmp.ge.s32.totalorder %s35_s17, 4  ;;  %p627_p1 = scmp.ge.s32.totalorder %s746_s16, 1 }
   0x5   : > { %p217_p2 = scmp.lt.s32.totalorder %s746_s16, 9 }
   0x6   : > { %s855_s17 = smov (%p37_p0, %s35_s17), 0  ;;  %s857_s18 = smov (!%p37_p0, %s39_s18), %s742_s15 }
   0x7   : > { %p218_p3 = pnand %p627_p1, %p217_p2  ;;  %p41_p4 = scmp.ge.s32.totalorder %s857_s18, 2 }
   0x8   : > { %p275_p5 = scmp.lt.s32.totalorder (!%p218_p3), %s734_s13, 1  ;;  %p277_p6 = scmp.lt.s32.totalorder (!%p218_p3), %s730_s12, 3  ;;  %vm327_vm0 = vcmask (!%p218_p3), 64512   ;;  %v748_v0 = vmov (!%p218_p3), 0.0   ;;  %vm749_vm1 = vmmov (!%p218_p3), 0   ;;  %vm324_vm2 = vcmask (!%p218_p3), 7168  }
   0x9   : > { %s859_s18 = smov (%p41_p4, %s857_s18), 0  ;;  %221 = sbr.rel (%p218_p3) target bundleno = 827 (0x33b), region = 32 }
   0xa   : > { %644 = vmatprep.subr.bf16.mxu0 (!%p218_p3), %v748_v0  ;;  %328 = vst.msk [vmem:[#allocation4] sm:$0xff] (!%p218_p3), %vm327_vm0, %v748_v0  ;;  %646 = vmatprep.mubr.msk.bf16.mxu0 (!%p218_p3), %vm749_vm1, %v748_v0  ;;  %v750_v4 = vmov (!%p218_p3), -1e+30   ;;  %v751_v10 = vmov (!%p218_p3), 0   ;;  %vm414_vm3 = vcmask (!%p218_p3), 1043456   ;;  %vm474_vm4 = vcmask (!%p218_p3), 60416  }
   0xb   : > { %650 = vmatprep.subr.bf16.mxu1 (!%p218_p3), %v748_v0  ;;  %652 = vmatprep.mubr.msk.bf16.mxu1 (!%p218_p3), %vm749_vm1, %v748_v0  ;;  %325 = vst.msk [vmem:[#allocation2] sm:$0xff] (!%p218_p3), %vm324_vm2, %v750_v4  ;;  %326 = vst.msk [vmem:[#allocation3] sm:$0xff] (!%p218_p3), %vm324_vm2, %v748_v0 }
   0xc   : > { %700 = vset.pattern.permute.xlu0 (!%p218_p3), %v751_v10  ;;  %701 = vset.pattern.permute.xlu1 (!%p218_p3), %v751_v10 }
  0x10   : > { %s861_s13 = smov (!%p275_p5, %s734_s13), 1  ;;  %s863_s12 = smov (!%p277_p6, %s730_s12), 3 }
  0x11   : > { %s628_s19 = sshll.u32 %s861_s13, 2  ;;  %v403_v31 = vld [vmem:[#allocation4] sm:$0xff] }
  0x12   : > { %s283_s20 = sadd.s32 %s628_s19, %s863_s12  ;;  %v379_v11 = vld [vmem:[#allocation2] sm:$0xff]  ;;  %v395_v25 = vld [vmem:[#allocation3] sm:$0xff] }
  0x13   : > { %s803_s21 = sshll.u32 %s283_s20, 2 }
  0x14   : > { %s296_s24 = scalar_lea.vmem %s847_s1, %s803_s21  ;;  %s285_s27 = scalar_lea.vmem %s846_s0, %s803_s21 }
  0x15   : > { %v330_v1 = vld [vmem:[%s296_s24] sm:$0xf]  ;;  %s307_s30 = scalar_lea.vmem %s848_s2, %s803_s21  ;;  %s318_s6 = scalar_lea.vmem %s849_s3, %s803_s21 }
  0x16   : > { %v337_v2 = vsel %vm327_vm0, %v330_v1, 0  ;;  %v329_v3 = vld [vmem:[%s285_s27] sm:$0xf] }
  0x17   : > { %645 = vmatpush3.bf16.xpose.msra.mxu0 %v337_v2  ;;  %v331_v15 = vld [vmem:[%s307_s30] sm:$0xf] }
  0x18   : > { %v416_v16 = vsel %vm414_vm3, %v331_v15, 0 }
  0x19   : > { %651 = vmatpush3.bf16.msra.mxu1 %v416_v16 }
  0x1e   : > { %647 = vmatmul.mubr.msk.bf16.vlgmr.msra.gmra.mrb[0].mxu0 %vm327_vm0, %v329_v3 }
  0xf1   : > { %v373_v5 = vpop.f32.mrb[0].mxu0 }
  0xf2   : > { %v648_v6 = vpop.f32.mrb[1].mxu0  ;;  %v380_v7 = vsel %vm327_vm0, %v373_v5, -inf }
  0xf3   : > { %381 = vmax.xlane.f32.xlu0 %v380_v7  ;;  %v376_v8 = vpop.f32.mrb[2].mxu0 }
  0xf4   : > { %v649_v9 = vpop.f32.mrb[3].mxu0 }
 0x180   : > { %v382_v12 = vpop.xlane.xlu0 %381 }
 0x181   : > { %v383_v13 = vmax.f32 %v379_v11, %v382_v12 }
 0x183   : > { %v384_v14 = vsub.f32 %v379_v11, %v383_v13  ;;  %460 = vst.msk [vmem:[#allocation2] sm:$0xff] %vm324_vm2, %v383_v13  ;;  %389 = vperm.xlu0 %700, %v383_v13  }
 0x185   : > { %v385_v23 = vmul.f32 1.442695, %v384_v14 }
 0x202   : > { %v390_v17 = vpop.permute.xlu0 %389 }
 0x203   : > { %v392_v18 = vsub.f32 %v373_v5, %v390_v17 }
 0x205   : > { %v393_v19 = vmul.f32 1.442695, %v392_v18 }
 0x207   : > { %702 = vpow2.f32 %v393_v19 }
 0x208   : > { %704 = vpow2.f32 %v385_v23 }
 0x211   : > { %v703_v20 = vpop.eup %702 }
 0x212   : > { %v397_v21 = vsel %vm327_vm0, %v703_v20, 0.0  ;;  %v410_v22 = vpack.c.bf16 %v703_v20, %v703_v20  ;;  %v705_v24 = vpop.eup %704 }
 0x213   : > { %398 = vadd.xlane.f32.xlu1 %v397_v21  ;;  %v396_v26 = vmul.f32 %v705_v24, %v395_v25 }
 0x214   : > { %653 = vmatmul.mubr.msk.bf16.vlgmr.msra.gmra.mrb[0].mxu1 %vm327_vm0, %v410_v22 }
 0x224   : > { %406 = vperm.xlu1 %701, %v705_v24  }
 0x2a0   : > { %v399_v27 = vpop.xlane.xlu1 %398 }
 0x2a1   : > { %v400_v28 = vadd.f32 %v399_v27, %v396_v26 }
 0x2a3   : > { %402 = vst.msk [vmem:[#allocation3] sm:$0xff] %vm324_vm2, %v400_v28 }
 0x2a4   : > { %v407_v32 = vpop.permute.xlu1 %406 }
 0x2a5   : > { %v409_v33 = vmul.f32 %v407_v32, %v403_v31 }
 0x2aa   : > { %v464_v29 = vld [vmem:[#allocation3] sm:$0xff] }
 0x2ab   : > { %706 = vrcp.f32 %v464_v29 }
 0x2b5   : > { %v707_v30 = vpop.eup %706 }
 0x2b6   : > { %469 = vperm.xlu1 %701, %v707_v30  }
 0x2e7   : > { %v452_v34 = vpop.f32.mrb[0].mxu1 }
 0x2e8   : > { %v458_v35 = vadd.f32 %v452_v34, %v409_v33  ;;  %v654_v36 = vpop.f32.mrb[1].mxu1 }
 0x2e9   : > { %v455_v37 = vpop.f32.mrb[2].mxu1 }
 0x2ea   : > { %459 = vst.msk [vmem:[#allocation4] sm:$0xff] %vm327_vm0, %v458_v35  ;;  %v655_v38 = vpop.f32.mrb[3].mxu1 }
 0x2f1   : > { %v466_v39 = vld [vmem:[#allocation4] sm:$0xff] }
 0x335   : > { %v470_v40 = vpop.permute.xlu1 %469 }
 0x336   : > { %v472_v41 = vmul.f32 %v470_v40, %v466_v39 }
 0x338   : > { %v473_v42 = vpack.c.bf16 %v472_v41, %v472_v41 }
 0x33a   : > { %475 = vst.msk [vmem:[%s318_s6] sm:$0xf] %vm474_vm4, %v473_v42 }
 0x33b PF: > { %s13_s16 = sadd.s32 1, %s746_s16   ;;  %s850_s12 = smov %s738_s14 }
 0x33c   : > { %p10_p7 = scmp.ge.s32.totalorder %s13_s16, 10   ;;  %s851_s13 = smov %s742_s15 }
 0x33d   : > { %s852_s14 = smov %s855_s17  ;;  %s853_s15 = smov %s859_s18 }
 0x33e   :  { %12 = sbr.rel (!%p10_p7) target bundleno = 3 (0x3), region = 76 }

// kernel: attention_moe_qkv_forward.5
= control target key start
LH: loop header
LB: loop body
LE: loop exit
PB: predicated region body
PF: predicated region fallthrough
CT: control target
= control target key end

     0   :  { %v177_v1 = vmov 0.0   ;;  %vm178_vm0 = vmmov 0   ;;  %vm20_vm1 = vcmask 261120   ;;  %s233_s0 = inlined_call_operand.vmem [shape: bf16[16,32], index: 0, kind: input, shape index: {}]   ;;  %s234_s1 = inlined_call_operand.vmem [shape: bf16[32,32], index: 1, kind: input, shape index: {}]   ;;  %s235_s2 = inlined_call_operand.vmem [shape: f32[1,32], index: 2, kind: input, shape index: {}]   ;;  %s236_s3 = inlined_call_operand.hbm [shape: f32[16,32], index: 3, kind: output, shape index: {}]  }
   0x1   :  { %v150_v0 = vld [vmem:[%s234_s1] sm:$0xff]   ;;  %137 = vmatprep.subr.bf16.mxu0 %v177_v1  ;;  %v151_v2 = vld [vmem:[%s234_s1 + $0x8] sm:$0xff]   ;;  %141 = vmatprep.mubr.msk.bf16.mxu0 %vm178_vm0, %v177_v1  ;;  %21 = vst.msk [vmem:[#allocation2] sm:$0xff] %vm20_vm1, %v177_v1  ;;  %22 = vst.msk [vmem:[#allocation2 + $0x8] sm:$0xff] %vm20_vm1, %v177_v1 }
   0x2   :  { %138 = vmatpush3.bf16.msra.mxu0 %v150_v0 }
   0x3   :  { %139 = vmatprep.subr.bf16.mxu0 %v177_v1 }
   0x4   :  { %8 = vsyncpa [#allocation4], 0  ;;  %v152_v3 = vld [vmem:[%s233_s0] sm:$0xff]   ;;  %s179_s0 = smov [#allocation3]  }
   0x5   :  { %v133_v12 = vld [vmem:[%s235_s2] ss:$0 sm:$0xff]  ;;  %s118_s19 = sshll.u32 %s179_s0, 4  ;;  %s119_s19 = int_to_ptr.vmem [resolvable:$true] %s118_s19 }
   0x6   :  { %140 = vmatpush3.bf16.msra.mxu0 %v151_v2  ;;  %s153_s20 = scalar_lea.vmem %s119_s19, 256  ;;  %p158_p1 = scmp.lt.s32.totalorder %s119_s19, %s119_s19 }
   0x7   :  { %p154_p0 = scmp.ne.s32.totalorder %s119_s19, %s153_s20  ;;  %p159_p2 = scmp.lt.s32.totalorder %s153_s20, %s153_s20 }
   0x8   :  { %v23_v4 = vld [vmem:[#allocation2] sm:$0xff]  ;;  %v24_v6 = vld [vmem:[#allocation2 + $0x8] sm:$0xff] }
   0x9   :  { %142 = vmatmul.mubr.msk.bf16.vlgmr.msra.gmra.mrb[0].mxu0 %vm20_vm1, %v152_v3  ;;  %p160_p3 = por %p159_p2, %p158_p1 }
   0xb   :  { %p161_p4 = pnand %p160_p3, %p154_p0 }
  0xdc   :  { %v86_v5 = vpop.f32.mrb[0].mxu0 }
  0xdd   :  { %v93_v7 = vadd.f32 %v86_v5, %v23_v4  ;;  %v143_v8 = vpop.f32.mrb[1].mxu0 }
  0xde   :  { %v89_v9 = vpop.f32.mrb[2].mxu0 }
  0xdf   :  { %95 = vst.msk [vmem:[#allocation2] sm:$0xff] %vm20_vm1, %v93_v7  ;;  %v94_v10 = vadd.f32 %v89_v9, %v24_v6  ;;  %v144_v11 = vpop.f32.mrb[3].mxu0 }
  0xe1   :  { %96 = vst.msk [vmem:[#allocation2 + $0x8] sm:$0xff] %vm20_vm1, %v94_v10 }
  0xe6   :  { %v100_v13 = vld [vmem:[#allocation2] sm:$0xff] }
  0xe7   :  { %v109_v14 = vadd.f32 %v133_v12, %v100_v13 }
  0xe8   :  { %v101_v15 = vld [vmem:[#allocation2 + $0x8] sm:$0xff] }
  0xe9   :  { %v110_v16 = vadd.f32 %v133_v12, %v101_v15  ;;  %111 = vst.msk [vmem:[#allocation3] sm:$0xff] %vm20_vm1, %v109_v14 }
  0xeb   :  { %112 = vst.msk [vmem:[#allocation3 + $0x8] sm:$0xff] %vm20_vm1, %v110_v16 }
  0xec   :  { %164 = shalt.err (!%p161_p4)
}
  0xed   :  { %s165_s22 = scalar_lea.hbm %s236_s3, 256 }
  0xee   :  { %p166_p5 = scmp.ne.s32.totalorder %s236_s3, %s165_s22  ;;  %p169_p6 = scmp.lt.u32.totalorder %s165_s22, %s236_s3 }
  0xf0   :  { %p171_p7 = pnand %p169_p6, %p166_p5 }
  0xf2   :  { %174 = shalt.err (!%p171_p7)
}
  0xf3   :  { %s180_s27 = smov 128   ;;  %s181_s28 = smov 8  }
  0xf4   :  { %124 = dma.vmem_to_hbm [thread:$0]  %s119_s19, 256, %s236_s3, [#allocation4], %s180_s27, %s180_s27, %s181_s28  }
  0xf5   :  { %175 = dma.done.wait [#allocation4], 256  }
  0xf6   :  { %176 = vsyncadd [#allocation4], 4294967040 }
  0xf7   :  { %128 = vsyncpa [#allocation4], 1 }

// kernel: attention_moe_qkv_forward.3
= control target key start
LH: loop header
LB: loop body
LE: loop exit
PB: predicated region body
PF: predicated region fallthrough
CT: control target
= control target key end

     0   :  { %vm28_vm0 = vcmask 261120   ;;  %v711_v0 = vmov 0.0   ;;  %vm712_vm1 = vmmov 0   ;;  %v713_v4 = vmov 0   ;;  %s718_s27 = smov 96   ;;  %s946_s1 = inlined_call_operand.vmem [shape: bf16[4,32,96], index: 1, kind: input, shape index: {}]   ;;  %s947_s0 = inlined_call_operand.vmem [shape: bf16[16,32], index: 0, kind: input, shape index: {}]   ;;  %s948_s4 = inlined_call_operand.vmem [shape: f32[16,4], index: 4, kind: input, shape index: {}]   ;;  %s949_s3 = inlined_call_operand.vmem [shape: f32[16,4], index: 3, kind: input, shape index: {}]   ;;  %s950_s2 = inlined_call_operand.vmem [shape: f32[16,4], index: 2, kind: input, shape index: {}]   ;;  %s951_s5 = inlined_call_operand.vmem [shape: bf16[16,32], index: 5, kind: output, shape index: {0}]   ;;  %s952_s6 = inlined_call_operand.vmem [shape: bf16[16,32], index: 6, kind: output, shape index: {1}]   ;;  %s953_s7 = inlined_call_operand.vmem [shape: bf16[16,32], index: 7, kind: output, shape index: {2}]  }
   0x1   :  { %646 = vmatprep.subr.bf16.mxu0 %v711_v0  ;;  %v702_v1 = vld [vmem:[%s946_s1] sm:$0xff]   ;;  %654 = vmatprep.subr.bf16.mxu1 %v711_v0  ;;  %29 = vst.msk [vmem:[#allocation2] sm:$0xff] %vm28_vm0, %v711_v0  ;;  %30 = vst.msk [vmem:[#allocation2 + $0x8] sm:$0xff] %vm28_vm0, %v711_v0  ;;  %v703_v2 = vld [vmem:[%s946_s1 + $0x10] sm:$0xff]   ;;  %v714_v15 = vmov 1   ;;  %v715_v16 = vmov 2  }
   0x2   :  { %31 = vst.msk [vmem:[#allocation3] sm:$0xff] %vm28_vm0, %v711_v0  ;;  %32 = vst.msk [vmem:[#allocation3 + $0x8] sm:$0xff] %vm28_vm0, %v711_v0  ;;  %650 = vmatprep.mubr.msk.bf16.mxu0 %vm712_vm1, %v711_v0  ;;  %658 = vmatprep.mubr.msk.bf16.mxu1 %vm712_vm1, %v711_v0  ;;  %v704_v3 = vld [vmem:[%s946_s1 + $0x8] sm:$0xff]   ;;  %v705_v5 = vld [vmem:[%s946_s1 + $0x18] sm:$0xff]   ;;  %v716_v17 = vmov 3   ;;  %vm558_vm2 = vcmask 257024  }
   0x3   :  { %33 = vst.msk [vmem:[#allocation4] sm:$0xff] %vm28_vm0, %v711_v0  ;;  %34 = vst.msk [vmem:[#allocation4 + $0x8] sm:$0xff] %vm28_vm0, %v711_v0  ;;  %647 = vmatpush3.bf16.msra.mxu0 %v702_v1  ;;  %687 = vset.pattern.permute.xlu1 %v713_v4  ;;  %v706_v6 = vld [vmem:[%s947_s0] sm:$0xff]   ;;  %v709_v8 = vld [vmem:[%s946_s1 + $0x30] sm:$0xff]  }
   0x4   :  { %655 = vmatpush3.bf16.msra.mxu1 %v703_v2  ;;  %648 = vmatprep.subr.bf16.mxu0 %v711_v0  ;;  %v707_v7 = vld [vmem:[%s946_s1 + $0x20] sm:$0xff]   ;;  %v708_v10 = vld [vmem:[%s946_s1 + $0x28] sm:$0xff]   ;;  %v710_v12 = vld [vmem:[%s946_s1 + $0x38] sm:$0xff]  }
   0x5   :  { %656 = vmatprep.subr.bf16.mxu1 %v711_v0  ;;  %686 = vset.pattern.permute.xlu0 %v713_v4  ;;  %v41_v9 = vld [vmem:[%s948_s4] sm:$0xff]  ;;  %v42_v13 = vld [vmem:[%s948_s4 + $0x8] sm:$0xff] }
   0x6   :  { %v39_v11 = vld [vmem:[%s949_s3] sm:$0xff]  ;;  %157 = vperm.xlu1 %687, %v41_v9   ;;  %v40_v14 = vld [vmem:[%s949_s3 + $0x8] sm:$0xff] }
   0x7   :  { %649 = vmatpush3.bf16.msra.mxu0 %v704_v3  ;;  %131 = vperm.xlu0 %686, %v39_v11   ;;  %v819_v18 = vld [vmem:[%s950_s2 + $0x8] sm:$0xff]  ;;  %v826_v19 = vld [vmem:[%s950_s2] sm:$0xff]  ;;  %s717_s2 = smov 64  }
   0x8   :  { %657 = vmatpush3.bf16.msra.mxu1 %v705_v5  ;;  %662 = vmatprep.subr.bf16.mxu0 %v711_v0  ;;  %v109_v39 = vld [vmem:[#allocation2] sm:$0xff]  ;;  %v110_v46 = vld [vmem:[#allocation2 + $0x8] sm:$0xff] }
   0x9   :  { %670 = vmatprep.subr.bf16.mxu1 %v711_v0 }
   0xa   :  { %651 = vmatmul.mubr.msk.bf16.vlgmr.msra.gmra.mrb[0].mxu0 %vm28_vm0, %v706_v6  ;;  %162 = vperm.xlu1 %687, %v42_v13  }
   0xb   :  { %659 = vmatmul.mubr.msk.bf16.vlgmr.msra.gmra.mrb[0].mxu1 %vm28_vm0, %v706_v6  ;;  %663 = vmatpush3.bf16.msra.mxu0 %v707_v7 }
   0xc   :  { %664 = vmatprep.subr.bf16.mxu0 %v711_v0  ;;  %666 = vmatprep.mubr.msk.bf16.mxu0 %vm712_vm1, %v711_v0 }
   0xd   :  { %671 = vmatpush3.bf16.msra.mxu1 %v709_v8  ;;  %674 = vmatprep.mubr.msk.bf16.mxu1 %vm712_vm1, %v711_v0 }
   0xe   :  { %672 = vmatprep.subr.bf16.mxu1 %v711_v0  ;;  %136 = vperm.xlu0 %686, %v40_v14  }
   0xf   :  { %665 = vmatpush3.bf16.msra.mxu0 %v708_v10  ;;  %689 = vset.pattern.permute.xlu1 %v714_v15 }
  0x10   :  { %260 = vperm.xlu1 %689, %v40_v14  }
  0x11   :  { %673 = vmatpush3.bf16.msra.mxu1 %v710_v12 }
  0x12   :  { %667 = vmatmul.mubr.msk.bf16.vlgmr.msra.gmra.mrb[4].mxu0 %vm28_vm0, %v706_v6  ;;  %688 = vset.pattern.permute.xlu0 %v714_v15 }
  0x13   :  { %256 = vperm.xlu0 %688, %v39_v11  }
  0x14   :  { %675 = vmatmul.mubr.msk.bf16.vlgmr.msra.gmra.mrb[4].mxu1 %vm28_vm0, %v706_v6  ;;  %280 = vperm.xlu1 %689, %v41_v9  }
  0x17   :  { %284 = vperm.xlu0 %688, %v42_v13  }
  0x18   :  { %690 = vset.pattern.permute.xlu1 %v715_v16 }
  0x19   :  { %378 = vperm.xlu1 %690, %v39_v11  }
  0x1b   :  { %691 = vset.pattern.permute.xlu0 %v715_v16 }
  0x1c   :  { %382 = vperm.xlu0 %691, %v40_v14  }
  0x1d   :  { %402 = vperm.xlu1 %690, %v41_v9  }
  0x20   :  { %692 = vset.pattern.permute.xlu0 %v716_v17 }
  0x21   :  { %500 = vperm.xlu0 %692, %v39_v11   ;;  %406 = vperm.xlu1 %690, %v42_v13  }
  0x25   :  { %528 = vperm.xlu0 %692, %v42_v13   ;;  %693 = vset.pattern.permute.xlu1 %v716_v17 }
  0x26   :  { %504 = vperm.xlu1 %693, %v40_v14  }
  0x29   :  { %695 = vset.pattern.permute.xlu0 %v713_v4 }
  0x2a   :  { %118 = vperm.xlu0 %695, %v819_v18   ;;  %524 = vperm.xlu1 %693, %v41_v9  }
  0x2e   :  { %696 = vset.pattern.permute.xlu0 %v714_v15  ;;  %694 = vset.pattern.permute.xlu1 %v713_v4 }
  0x2f   :  { %240 = vperm.xlu0 %696, %v826_v19   ;;  %113 = vperm.xlu1 %694, %v826_v19  }
  0x33   :  { %699 = vset.pattern.permute.xlu0 %v715_v16  ;;  %697 = vset.pattern.permute.xlu1 %v714_v15 }
  0x34   :  { %244 = vperm.xlu1 %697, %v819_v18  }
  0x38   :  { %698 = vset.pattern.permute.xlu1 %v715_v16 }
  0x85   :  { %v158_v20 = vpop.permute.xlu1 %157 }
  0x86   :  { %v132_v23 = vpop.permute.xlu0 %131 }
  0x89   :  { %v163_v21 = vpop.permute.xlu1 %162 }
  0x8d   :  { %v137_v25 = vpop.permute.xlu0 %136 }
  0x8f   :  { %v261_v22 = vpop.permute.xlu1 %260 }
  0x92   :  { %v257_v27 = vpop.permute.xlu0 %256 }
  0x93   :  { %v832_v24 = vpop.permute.xlu1 %280 }
  0x96   :  { %v285_v29 = vpop.permute.xlu0 %284 }
  0x98   :  { %v834_v26 = vpop.permute.xlu1 %378 }
  0x9b   :  { %v838_v31 = vpop.permute.xlu0 %382 }
  0x9c   :  { %v403_v28 = vpop.permute.xlu1 %402 }
  0xa0   :  { %v836_v30 = vpop.permute.xlu1 %406  ;;  %v842_v33 = vpop.permute.xlu0 %500 }
  0xa4   :  { %v846_v35 = vpop.permute.xlu0 %528 }
  0xa5   :  { %v840_v32 = vpop.permute.xlu1 %504 }
  0xa9   :  { %v844_v34 = vpop.permute.xlu1 %524  ;;  %v119_v37 = vpop.permute.xlu0 %118 }
  0xae   :  { %v114_v36 = vpop.permute.xlu1 %113  ;;  %v241_v55 = vpop.permute.xlu0 %240 }
  0xb3   :  { %v245_v58 = vpop.permute.xlu1 %244 }
  0xdd   :  { %v102_v38 = vpop.f32.mrb[0].mxu0 }
  0xde   :  { %v121_v40 = vmul.f32 %v114_v36, %v102_v38  ;;  %v139_v41 = vmul.f32 %v132_v23, %v102_v38  ;;  %v165_v42 = vmul.f32 %v158_v20, %v102_v38  ;;  %v652_v43 = vpop.f32.mrb[1].mxu0  ;;  %v230_v44 = vpop.f32.mrb[0].mxu1 }
  0xdf   :  { %v105_v45 = vpop.f32.mrb[2].mxu0  ;;  %v660_v47 = vpop.f32.mrb[1].mxu1  ;;  %v263_v52 = vmul.f32 %v257_v27, %v230_v44  ;;  %v247_v63 = vmul.f32 %v241_v55, %v230_v44  ;;  %v287_v12 = vmul.f32 %v832_v24, %v230_v44  ;;  %v128_v27 = vld [vmem:[#allocation3 + $0x8] sm:$0xff] }
  0xe0   :  { %v123_v48 = vadd.f32 %v121_v40, %v109_v39  ;;  %v122_v49 = vmul.f32 %v119_v37, %v105_v45  ;;  %v233_v50 = vpop.f32.mrb[2].mxu1  ;;  %169 = vrot.lane.b32.xlu0 %v165_v42, %s717_s2  ;;  %v653_v51 = vpop.f32.mrb[3].mxu0  ;;  %143 = vrot.lane.b32.xlu1 %v139_v41, %s718_s27  ;;  %v140_v60 = vmul.f32 %v137_v25, %v105_v45 }
  0xe1   :  { %v661_v53 = vpop.f32.mrb[3].mxu1  ;;  %v264_v57 = vmul.f32 %v261_v22, %v233_v50  ;;  %v288_v4 = vmul.f32 %v285_v29, %v233_v50  ;;  %v248_v6 = vmul.f32 %v245_v58, %v233_v50  ;;  %v166_v8 = vmul.f32 %v163_v21, %v105_v45  ;;  %v153_v21 = vld [vmem:[#allocation4] sm:$0xff]  ;;  %v127_v22 = vld [vmem:[#allocation3] sm:$0xff] }
  0xe2   :  { %125 = vst.msk [vmem:[#allocation2] sm:$0xff] %vm28_vm0, %v123_v48  ;;  %v124_v54 = vadd.f32 %v122_v49, %v110_v46 }
  0xe4   :  { %126 = vst.msk [vmem:[#allocation2 + $0x8] sm:$0xff] %vm28_vm0, %v124_v54  ;;  %366 = vperm.xlu0 %699, %v819_v18   ;;  %267 = vrot.lane.b32.xlu1 %v263_v52, %s718_s27 }
  0xe5   :  { %v854_v56 = vpop.f32.mrb[4].mxu0 }
  0xe6   :  { %v668_v59 = vpop.f32.mrb[5].mxu0  ;;  %v409_v11 = vmul.f32 %v403_v28, %v854_v56  ;;  %v385_v14 = vmul.f32 %v834_v26, %v854_v56 }
  0xe7   :  { %v856_v61 = vpop.f32.mrb[6].mxu0  ;;  %v858_v62 = vpop.f32.mrb[4].mxu1 }
  0xe8   :  { %269 = vrot.lane.b32.xlu0 %v264_v57, %s718_s27  ;;  %v669_v0 = vpop.f32.mrb[7].mxu0  ;;  %v676_v1 = vpop.f32.mrb[5].mxu1  ;;  %145 = vrot.lane.b32.xlu1 %v140_v60, %s718_s27  ;;  %v386_v16 = vmul.f32 %v838_v31, %v856_v61  ;;  %v410_v20 = vmul.f32 %v836_v30, %v856_v61  ;;  %v154_v31 = vld [vmem:[#allocation4 + $0x8] sm:$0xff] }
  0xe9   :  { %v237_v2 = vld [vmem:[#allocation2] sm:$0xff]  ;;  %700 = vset.pattern.permute.xlu0 %v716_v17  ;;  %v863_v3 = vpop.f32.mrb[6].mxu1 }
  0xea   :  { %v249_v5 = vadd.f32 %v247_v63, %v237_v2  ;;  %v677_v7 = vpop.f32.mrb[7].mxu1  ;;  %v508_v13 = vmul.f32 %v840_v32, %v863_v3  ;;  %v532_v15 = vmul.f32 %v846_v35, %v863_v3 }
  0xeb   :  { %v238_v9 = vld [vmem:[#allocation2 + $0x8] sm:$0xff] }
  0xec   :  { %251 = vst.msk [vmem:[#allocation2] sm:$0xff] %vm28_vm0, %v249_v5  ;;  %v250_v10 = vadd.f32 %v248_v6, %v238_v9  ;;  %293 = vrot.lane.b32.xlu0 %v288_v4, %s717_s2  ;;  %171 = vrot.lane.b32.xlu1 %v166_v8, %s717_s2 }
  0xee   :  { %252 = vst.msk [vmem:[#allocation2 + $0x8] sm:$0xff] %vm28_vm0, %v250_v10 }
  0xf0   :  { %413 = vrot.lane.b32.xlu0 %v409_v11, %s717_s2  ;;  %291 = vrot.lane.b32.xlu1 %v287_v12, %s717_s2 }
  0xf3   :  { %v359_v53 = vld [vmem:[#allocation2] sm:$0xff] }
  0xf4   :  { %484 = vperm.xlu0 %700, %v826_v19   ;;  %362 = vperm.xlu1 %698, %v826_v19   ;;  %v507_v19 = vmul.f32 %v842_v33, %v858_v62 }
  0xf5   :  { %v360_v40 = vld [vmem:[#allocation2 + $0x8] sm:$0xff] }
  0xf8   :  { %513 = vrot.lane.b32.xlu0 %v508_v13, %s718_s27  ;;  %389 = vrot.lane.b32.xlu1 %v385_v14, %s718_s27 }
  0xf9   :  { %701 = vset.pattern.permute.xlu1 %v716_v17  ;;  %v531_v17 = vmul.f32 %v844_v34, %v858_v62 }
  0xfc   :  { %537 = vrot.lane.b32.xlu0 %v532_v15, %s717_s2  ;;  %391 = vrot.lane.b32.xlu1 %v386_v16, %s718_s27 }
 0x100   :  { %415 = vrot.lane.b32.xlu1 %v410_v20, %s717_s2 }
 0x104   :  { %488 = vperm.xlu1 %701, %v819_v18  }
 0x108   :  { %511 = vrot.lane.b32.xlu1 %v507_v19, %s718_s27 }
 0x10c   :  { %535 = vrot.lane.b32.xlu1 %v531_v17, %s717_s2 }
 0x152   :  { %v170_v23 = vpop.permute.xlu0 %169  ;;  %v144_v25 = vpop.permute.xlu1 %143 }
 0x153   :  { %v175_v24 = vadd.f32 %v170_v23, %v153_v21  ;;  %v149_v26 = vadd.f32 %v144_v25, %v127_v22 }
 0x155   :  { %177 = vst.msk [vmem:[#allocation4] sm:$0xff] %vm28_vm0, %v175_v24  ;;  %151 = vst.msk [vmem:[#allocation3] sm:$0xff] %vm28_vm0, %v149_v26 }
 0x156   :  { %v268_v18 = vpop.permute.xlu1 %267 }
 0x15a   :  { %v146_v28 = vpop.permute.xlu1 %145 }
 0x15b   :  { %v150_v29 = vadd.f32 %v146_v28, %v128_v27 }
 0x15c   :  { %v253_v30 = vld [vmem:[#allocation3] sm:$0xff]  ;;  %v277_v35 = vld [vmem:[#allocation4] sm:$0xff] }
 0x15d   :  { %v273_v32 = vadd.f32 %v268_v18, %v253_v30  ;;  %152 = vst.msk [vmem:[#allocation3 + $0x8] sm:$0xff] %vm28_vm0, %v150_v29 }
 0x15e   :  { %v172_v33 = vpop.permute.xlu1 %171 }
 0x15f   :  { %275 = vst.msk [vmem:[#allocation3] sm:$0xff] %vm28_vm0, %v273_v32  ;;  %v176_v34 = vadd.f32 %v172_v33, %v154_v31 }
 0x161   :  { %178 = vst.msk [vmem:[#allocation4 + $0x8] sm:$0xff] %vm28_vm0, %v176_v34 }
 0x162   :  { %v292_v36 = vpop.permute.xlu1 %291 }
 0x163   :  { %v367_v37 = vpop.permute.xlu0 %366  ;;  %v297_v38 = vadd.f32 %v292_v36, %v277_v35 }
 0x164   :  { %v370_v39 = vmul.f32 %v367_v37, %v856_v61  ;;  %v254_v43 = vld [vmem:[#allocation3 + $0x8] sm:$0xff] }
 0x165   :  { %299 = vst.msk [vmem:[#allocation4] sm:$0xff] %vm28_vm0, %v297_v38 }
 0x166   :  { %v372_v41 = vadd.f32 %v370_v39, %v360_v40  ;;  %v375_v55 = vld [vmem:[#allocation3] sm:$0xff] }
 0x167   :  { %v270_v42 = vpop.permute.xlu0 %269 }
 0x168   :  { %374 = vst.msk [vmem:[#allocation2 + $0x8] sm:$0xff] %vm28_vm0, %v372_v41  ;;  %v274_v44 = vadd.f32 %v270_v42, %v254_v43  ;;  %v278_v46 = vld [vmem:[#allocation4 + $0x8] sm:$0xff] }
 0x16a   :  { %276 = vst.msk [vmem:[#allocation3 + $0x8] sm:$0xff] %vm28_vm0, %v274_v44 }
 0x16b   :  { %v294_v45 = vpop.permute.xlu0 %293 }
 0x16c   :  { %v298_v47 = vadd.f32 %v294_v45, %v278_v46  ;;  %v399_v48 = vld [vmem:[#allocation4] sm:$0xff] }
 0x16e   :  { %300 = vst.msk [vmem:[#allocation4 + $0x8] sm:$0xff] %vm28_vm0, %v298_v47 }
 0x16f   :  { %v414_v49 = vpop.permute.xlu0 %413  ;;  %v482_v10 = vld [vmem:[#allocation2 + $0x8] sm:$0xff] }
 0x170   :  { %v419_v50 = vadd.f32 %v414_v49, %v399_v48 }
 0x171   :  { %v376_v60 = vld [vmem:[#allocation3 + $0x8] sm:$0xff] }
 0x172   :  { %421 = vst.msk [vmem:[#allocation4] sm:$0xff] %vm28_vm0, %v419_v50 }
 0x173   :  { %v363_v51 = vpop.permute.xlu1 %362  ;;  %v485_v59 = vpop.permute.xlu0 %484 }
 0x174   :  { %v369_v52 = vmul.f32 %v363_v51, %v854_v56  ;;  %v491_v0 = vmul.f32 %v485_v59, %v858_v62 }
 0x175   :  { %v400_v2 = vld [vmem:[#allocation4 + $0x8] sm:$0xff] }
 0x176   :  { %v371_v54 = vadd.f32 %v369_v52, %v359_v53 }
 0x177   :  { %v390_v57 = vpop.permute.xlu1 %389  ;;  %v514_v6 = vpop.permute.xlu0 %513 }
 0x178   :  { %373 = vst.msk [vmem:[#allocation2] sm:$0xff] %vm28_vm0, %v371_v54  ;;  %v395_v58 = vadd.f32 %v390_v57, %v375_v55 }
 0x17a   :  { %397 = vst.msk [vmem:[#allocation3] sm:$0xff] %vm28_vm0, %v395_v58 }
 0x17b   :  { %v392_v61 = vpop.permute.xlu1 %391  ;;  %v538_v16 = vpop.permute.xlu0 %537 }
 0x17c   :  { %v396_v63 = vadd.f32 %v392_v61, %v376_v60 }
 0x17e   :  { %398 = vst.msk [vmem:[#allocation3 + $0x8] sm:$0xff] %vm28_vm0, %v396_v63 }
 0x17f   :  { %v481_v1 = vld [vmem:[#allocation2] sm:$0xff]  ;;  %v416_v56 = vpop.permute.xlu1 %415 }
 0x180   :  { %v493_v4 = vadd.f32 %v491_v0, %v481_v1  ;;  %v420_v5 = vadd.f32 %v416_v56, %v400_v2 }
 0x181   :  { %v497_v62 = vld [vmem:[#allocation3] sm:$0xff] }
 0x182   :  { %495 = vst.msk [vmem:[#allocation2] sm:$0xff] %vm28_vm0, %v493_v4  ;;  %422 = vst.msk [vmem:[#allocation4 + $0x8] sm:$0xff] %vm28_vm0, %v420_v5 }
 0x183   :  { %v489_v7 = vpop.permute.xlu1 %488 }
 0x184   :  { %v492_v8 = vmul.f32 %v489_v7, %v863_v3  ;;  %v521_v3 = vld [vmem:[#allocation4] sm:$0xff] }
 0x185   :  { %v498_v9 = vld [vmem:[#allocation3 + $0x8] sm:$0xff] }
 0x186   :  { %v518_v11 = vadd.f32 %v514_v6, %v498_v9  ;;  %v494_v12 = vadd.f32 %v492_v8, %v482_v10 }
 0x187   :  { %v512_v13 = vpop.permute.xlu1 %511 }
 0x188   :  { %520 = vst.msk [vmem:[#allocation3 + $0x8] sm:$0xff] %vm28_vm0, %v518_v11  ;;  %496 = vst.msk [vmem:[#allocation2 + $0x8] sm:$0xff] %vm28_vm0, %v494_v12  ;;  %v517_v14 = vadd.f32 %v512_v13, %v497_v62 }
 0x189   :  { %v548_v15 = vld [vmem:[#allocation2] sm:$0xff]  ;;  %v522_v20 = vld [vmem:[#allocation4 + $0x8] sm:$0xff] }
 0x18a   :  { %v628_v19 = vpack.c.bf16 %v548_v15, %v548_v15  ;;  %v542_v17 = vadd.f32 %v538_v16, %v522_v20  ;;  %519 = vst.msk [vmem:[#allocation3] sm:$0xff] %vm28_vm0, %v517_v14 }
 0x18b   :  { %v536_v21 = vpop.permute.xlu1 %535 }
 0x18c   :  { %559 = vst.msk [vmem:[%s951_s5] sm:$0xf] %vm558_vm2, %v628_v19  ;;  %v541_v22 = vadd.f32 %v536_v21, %v521_v3 }
 0x18d   :  { %544 = vst.msk [vmem:[#allocation4 + $0x8] sm:$0xff] %vm28_vm0, %v542_v17 }
 0x18e   :  { %543 = vst.msk [vmem:[#allocation4] sm:$0xff] %vm28_vm0, %v541_v22 }
 0x18f   :  { %v562_v23 = vld [vmem:[#allocation3 + $0x8] sm:$0xff]  ;;  %v549_v24 = vld [vmem:[#allocation2 + $0x8] sm:$0xff] }
 0x190   :  { %v631_v25 = vpack.c.bf16 %v562_v23, %v562_v23  ;;  %v629_v26 = vpack.c.bf16 %v549_v24, %v549_v24 }
 0x191   :  { %v561_v18 = vld [vmem:[#allocation3] sm:$0xff] }
 0x192   :  { %572 = vst.msk [vmem:[%s952_s6 + $0x4] sm:$0xf] %vm558_vm2, %v631_v25  ;;  %560 = vst.msk [vmem:[%s951_s5 + $0x4] sm:$0xf] %vm558_vm2, %v629_v26  ;;  %v630_v27 = vpack.c.bf16 %v561_v18, %v561_v18 }
 0x194   :  { %v574_v28 = vld [vmem:[#allocation4 + $0x8] sm:$0xff]  ;;  %571 = vst.msk [vmem:[%s952_s6] sm:$0xf] %vm558_vm2, %v630_v27 }
 0x195   :  { %v633_v29 = vpack.c.bf16 %v574_v28, %v574_v28  ;;  %v573_v30 = vld [vmem:[#allocation4] sm:$0xff] }
 0x196   :  { %v632_v31 = vpack.c.bf16 %v573_v30, %v573_v30 }
 0x197   :  { %584 = vst.msk [vmem:[%s953_s7 + $0x4] sm:$0xf] %vm558_vm2, %v633_v29 }
 0x198   :  { %583 = vst.msk [vmem:[%s953_s7] sm:$0xf] %vm558_vm2, %v632_v31 }

</bundles_post_ra>
